<compile_context>
chip_gen: v7x
topology: tpu7x:2x2x1
jax: 0.10.0
libtpu: 0.0.40
codegen_flags: <defaults>
</compile_context>

<pallas_src>
import functools

import jax
import jax.numpy as jnp
from jax import lax
from jax.experimental import pallas as pl
from jax.experimental.pallas import tpu as pltpu


def _round_up(x, m):
    return ((x + m - 1) // m) * m


_ACTIVATIONS = {
    "relu": lambda v: jnp.maximum(v, 0.0),
    "silu": lambda v: v * jax.nn.sigmoid(v),
    "gelu": lambda v: jax.nn.gelu(v, approximate=False),
    "leakyrelu": lambda v: jnp.where(v >= 0, v, 0.01 * v),
}


def _tpu_vmem_and_cores():
    """Physical VMEM bytes and #TensorCores visible to one Pallas kernel."""
    kind = ""
    try:
        kind = jax.devices()[0].device_kind.lower()
    except Exception:
        pass
    vmem_phys = None
    try:
        info = pltpu.get_tpu_info()
        v = getattr(info, "vmem_capacity_bytes", None)
        if v:
            vmem_phys = int(v)
    except Exception:
        vmem_phys = None
    if not vmem_phys:
        vmem_phys = (64 << 20) if ("v7" in kind or "tpu7" in kind) else (128 << 20)
    # Megacore-class parts (2 TCs addressable by one kernel). Wrong guesses are safe:
    # "parallel" on a 1-TC part just runs sequentially.
    n_cores = 2 if any(t in kind for t in ("v7", "tpu7", "v4", "v5p")) else 1
    return vmem_phys, n_cores


def _choose_t_tile(B, Cp, T, halo_pad, n_depth, in_bytes, w_bytes, budget):
    """Largest 16-aligned time tile whose estimated VMEM footprint fits `budget`."""
    weight_bytes = (n_depth * (3 * Cp * Cp + Cp * Cp) * w_bytes
                    + n_depth * 2 * 8 * Cp * 4)          # biases (sublane-padded)
    t_max = min(_round_up(T, 16), 2048)
    cand = t_max
    while cand >= 16:
        w_pad = cand + 2 * halo_pad
        rows = B * w_pad
        foot = (2 * rows * Cp * in_bytes                 # halo'd input double buffer
                + rows * Cp * 4                          # running-activation scratch
                + 10 * rows * Cp * 4                     # worst-case live temporaries
                + 2 * B * cand * Cp * 4                  # output double buffer
                + weight_bytes)
        if foot <= budget:
            return cand
        cand -= 16
    return 16


def _resnet1d_fused_kernel(x_hbm, w1_hbm, b1_hbm, w2_hbm, b2_hbm, o_ref,
                           in_buf, in_sem, act_ref, w1_v, b1_v, w2_v, b2_v, w_sem,
                           *, dilations, t_tile, w_pad, halo_pad, t_valid, cp,
                           matmul_dtype, act_fn):
    """All residual blocks fused; one time tile (+ halo) per inner grid step.

    x_hbm : (B, T_grid + 2*halo_pad, Cp) zero-padded input, raw HBM ref (in_dtype)
    w1_hbm: (L, 3*Cp, Cp)  conv1 weights, 3 taps stacked along the INPUT dim
    b1_hbm: (L, 1, Cp)
    w2_hbm: (L, Cp, Cp)    1x1 conv weights
    b2_hbm: (L, 1, Cp)
    o_ref : (B, t_tile, Cp) output tile (auto-pipelined by its BlockSpec)
    in_buf: (2, B, w_pad, Cp) VMEM double buffer for the halo'd input window
    act_ref: (B*w_pad, Cp) f32 running residual (bounds live ranges across depth)
    w*_v / b*_v: persistent single-buffered VMEM weight copies
    """
    oc = pl.program_id(0)            # outer ("parallel") macro-chunk -> megacore split
    i = pl.program_id(1)             # inner ("arbitrary") time tile
    nti = pl.num_programs(1)
    g = oc * nti + i                 # global time-tile index

    def window_copy(tile_idx, slot):
        start = pl.multiple_of(tile_idx * t_tile, 16)
        return pltpu.make_async_copy(
            x_hbm.at[:, pl.ds(start, w_pad), :], in_buf.at[slot], in_sem.at[slot])

    @pl.when(i == 0)
    def _():
        # Prime the input pipeline and single-buffer the constant weights into VMEM
        # (once per core; re-issued per outer chunk, which is harmless).
        window_copy(g, 0).start()
        pltpu.make_async_copy(w1_hbm, w1_v, w_sem.at[0]).start()
        pltpu.make_async_copy(b1_hbm, b1_v, w_sem.at[1]).start()
        pltpu.make_async_copy(w2_hbm, w2_v, w_sem.at[2]).start()
        pltpu.make_async_copy(b2_hbm, b2_v, w_sem.at[3]).start()
        pltpu.make_async_copy(w1_hbm, w1_v, w_sem.at[0]).wait()
        pltpu.make_async_copy(b1_hbm, b1_v, w_sem.at[1]).wait()
        pltpu.make_async_copy(w2_hbm, w2_v, w_sem.at[2]).wait()
        pltpu.make_async_copy(b2_hbm, b2_v, w_sem.at[3]).wait()

    slot = i % 2

    # Prefetch the next window into the other buffer while we compute this one.
    @pl.when(i + 1 < nti)
    def _():
        window_copy(g + 1, 1 - slot).start()

    # Wait for the current window.
    window_copy(g, slot).wait()

    b = in_buf.shape[1]
    m = b * w_pad
    act_ref[...] = in_buf[slot].reshape(m, cp).astype(jnp.float32)

    # Row-validity mask: 1.0 where the row maps to a real sequence position, 0.0 in the
    # halo / right padding.  It must be re-applied every layer (bias terms make
    # out-of-range rows non-zero after the first block) to reproduce Conv1d's zero
    # padding exactly at tile / sequence boundaries.
    tw = lax.broadcasted_iota(jnp.int32, (m, 1), 0) % w_pad
    gpos = g * t_tile - halo_pad + tw
    valid = jnp.logical_and(gpos >= 0, gpos < t_valid).astype(jnp.float32)

    for l, d in enumerate(dilations):          # static unroll over depth
        x = act_ref[...]
        a = act_fn(x) * valid                  # f32
        # Input-side 3-tap concat: one (m, 3*Cp) @ (3*Cp, Cp) MXU matmul (K = 3*Cp
        # fills the 256-deep v6e/v7x MXU; rolls ride the XLU slot).  Wrap / cross-batch
        # garbage introduced by the rolls stays inside each window's discarded halo
        # rows, which requires halo_pad >= sum(dilations) (asserted in the wrapper).
        a_cat = jnp.concatenate(
            [pltpu.roll(a, d, 0).astype(matmul_dtype),
             a.astype(matmul_dtype),
             pltpu.roll(a, m - d, 0).astype(matmul_dtype)], axis=1)
        c1 = jnp.dot(a_cat, w1_v[l], preferred_element_type=jnp.float32) + b1_v[l]
        h = act_fn(c1).astype(matmul_dtype)
        y = jnp.dot(h, w2_v[l], preferred_element_type=jnp.float32) + b2_v[l]
        # Write the running residual back through VMEM each layer to bound live ranges
        # across the unrolled depth loop (keeps VMEM / vreg pressure flat in n_depth).
        act_ref[...] = x + y

    # Store per batch straight from the flat activation (no reshape/slice slab);
    # halo_pad and w_pad are 16-aligned so every store is a full-lane vst.
    for bb in range(b):
        row0 = bb * w_pad + halo_pad           # static, sublane-aligned
        o_ref[bb] = act_ref[pl.ds(row0, t_tile), :].astype(o_ref.dtype)


def _build_call(B, T, Cp, t_tile, nt_inner, n_outer, w_pad, halo_pad, n_depth,
                dilations, matmul_dtype, in_dtype, act_fn, vmem_limit):
    t_grid = n_outer * nt_inner * t_tile
    kernel = functools.partial(
        _resnet1d_fused_kernel,
        dilations=dilations, t_tile=t_tile, w_pad=w_pad, halo_pad=halo_pad,
        t_valid=T, cp=Cp, matmul_dtype=matmul_dtype, act_fn=act_fn)
    return pl.pallas_call(
        kernel,
        out_shape=jax.ShapeDtypeStruct((B, t_grid, Cp), jnp.float32),
        grid_spec=pltpu.PrefetchScalarGridSpec(
            num_scalar_prefetch=0,
            grid=(n_outer, nt_inner),
            in_specs=[pl.BlockSpec(memory_space=pl.ANY)] * 5,   # manual DMA for all
            out_specs=pl.BlockSpec((B, t_tile, Cp),
                                   lambda oc, i: (0, oc * nt_inner + i, 0)),
            scratch_shapes=[
                pltpu.VMEM((2, B, w_pad, Cp), in_dtype),        # input double buffer
                pltpu.SemaphoreType.DMA((2,)),
                pltpu.VMEM((B * w_pad, Cp), jnp.float32),       # running residual
                pltpu.VMEM((n_depth, 3 * Cp, Cp), matmul_dtype),  # conv1 weights
                pltpu.VMEM((n_depth, 1, Cp), jnp.float32),        # conv1 bias
                pltpu.VMEM((n_depth, Cp, Cp), matmul_dtype),      # conv2 weights
                pltpu.VMEM((n_depth, 1, Cp), jnp.float32),        # conv2 bias
                pltpu.SemaphoreType.DMA((4,)),
            ],
        ),
        compiler_params=pltpu.CompilerParams(
            # Outer axis sharded across TensorCores (megacore); inner axis must stay
            # sequential for the manual cross-iteration double buffering.
            dimension_semantics=("parallel", "arbitrary"),
            vmem_limit_bytes=vmem_limit,
        ),
    )


def _prepare_weights(params, C, Cp, w_dtype):
    """Stack & zero-pad torch-shaped weights; conv1 taps stacked along the INPUT dim."""
    n_depth = len(params)
    w1_all = jnp.zeros((n_depth, 3 * Cp, Cp), jnp.float32)
    b1_all = jnp.zeros((n_depth, 1, Cp), jnp.float32)
    w2_all = jnp.zeros((n_depth, Cp, Cp), jnp.float32)
    b2_all = jnp.zeros((n_depth, 1, Cp), jnp.float32)
    for l, p in enumerate(params):
        w1 = p["w1"]                                       # (C_out, C_in, 3)
        for k in range(3):
            w1_all = w1_all.at[l, k * Cp:k * Cp + C, :C].set(
                jnp.transpose(w1[:, :, k]))                # (C_in, C_out)
        b1_all = b1_all.at[l, 0, :C].set(p["b1"])
        w2_all = w2_all.at[l, :C, :C].set(jnp.transpose(p["w2"][:, :, 0]))
        b2_all = b2_all.at[l, 0, :C].set(p["b2"])
    return (w1_all.astype(w_dtype), b1_all, w2_all.astype(w_dtype), b2_all)


def init_resnet1d_params(key, n_in, n_depth, dilation_growth_rate=1,
                         reverse_dilation=True):
    """Deterministic parameter init mirroring the PyTorch module's shapes."""
    params = []
    dilations = [dilation_growth_rate ** depth for depth in range(n_depth)]
    if reverse_dilation:
        dilations = dilations[::-1]
    for d in dilations:
        key, k1, k2, k3, k4 = jax.random.split(key, 5)
        w1 = 0.1 * jax.random.normal(k1, (n_in, n_in, 3), jnp.float32)
        b1 = 0.1 * jax.random.normal(k2, (n_in,), jnp.float32)
        w2 = 0.1 * jax.random.normal(k3, (n_in, n_in, 1), jnp.float32)
        b2 = 0.1 * jax.random.normal(k4, (n_in,), jnp.float32)
        params.append(dict(w1=w1, b1=b1, w2=w2, b2=b2, dilation=d))
    return params


def resnet1d_pallas(x, params, *, matmul_dtype=None, t_tile=None,
                    channels_last=False, n_parallel=None, activation="relu"):
    """Forward pass.

    x: (B, C, T) like PyTorch, or (B, T, C) if channels_last=True (skips transposes).
    matmul_dtype: None -> bf16 MXU operands (f32 accumulation) on all generations;
                  pass jnp.float32 for an exact path.
    """
    if matmul_dtype is None:
        matmul_dtype = jnp.bfloat16        # bf16-native MXUs on v5e/v6e/v7x
    matmul_dtype = jnp.dtype(matmul_dtype)
    in_dtype = matmul_dtype                # bf16 input DMA halves HBM->VMEM bytes
    act_fn = _ACTIVATIONS[activation]

    if channels_last:
        B, T, C = x.shape
        x_btc = x
    else:
        B, C, T = x.shape
        x_btc = jnp.transpose(x, (0, 2, 1))

    n_depth = len(params)
    dilations = tuple(int(p["dilation"]) for p in params)
    halo = sum(dilations)
    Cp = _round_up(max(C, 128), 128)       # lane-dense channel axis
    halo_pad = max(_round_up(halo, 16), 16)
    # The in-kernel rolls wrap across batch / window boundaries; that garbage must stay
    # inside the discarded halo rows, which requires:
    assert halo_pad >= halo, "halo_pad must cover the total dilation reach"

    vmem_phys, n_cores = _tpu_vmem_and_cores()
    vmem_limit = int(vmem_phys * 0.75)     # ~96 MiB on 128 MiB parts, ~48 MiB on v7x
    budget = int(vmem_limit * 0.85)

    if t_tile is None:
        t_tile = _choose_t_tile(B, Cp, T, halo_pad, n_depth,
                                in_bytes=in_dtype.itemsize,
                                w_bytes=matmul_dtype.itemsize,
                                budget=budget)
    t_tile = max(16, _round_up(min(t_tile, _round_up(T, 16)), 16))

    nt_needed = -(-T // t_tile)
    n_outer = n_parallel if n_parallel is not None else n_cores
    n_outer = max(1, min(int(n_outer), nt_needed))
    nt_inner = -(-nt_needed // n_outer)
    t_grid = n_outer * nt_inner * t_tile
    w_pad = t_tile + 2 * halo_pad

    w1_all, b1_all, w2_all, b2_all = _prepare_weights(params, C, Cp, matmul_dtype)

    # BTC layout (channels on lanes); zero-pad channels to Cp and time by the halo on
    # the left and halo + tiling remainder on the right.
    x_p = jnp.pad(x_btc.astype(in_dtype),
                  ((0, 0), (halo_pad, (t_grid - T) + halo_pad), (0, Cp - C)))

    call = _build_call(B, T, Cp, t_tile, nt_inner, n_outer, w_pad, halo_pad,
                       n_depth, dilations, matmul_dtype, in_dtype, act_fn, vmem_limit)
    out = call(x_p, w1_all, b1_all, w2_all, b2_all)
    out = out[:, :T, :C]
    if not channels_last:
        out = jnp.transpose(out, (0, 2, 1))
    return out.astype(x.dtype)


# --- pure-JAX reference (verification only, uses XLA convs; relu / no-norm path) ---
def resnet1d_ref(x_nct, params):
    x = x_nct
    for p in params:
        d = int(p["dilation"])
        x_orig = x
        a = jnp.maximum(x, 0.0)
        y = lax.conv_general_dilated(
            a, p["w1"], window_strides=(1,), padding=[(d, d)],
            rhs_dilation=(d,), dimension_numbers=("NCH", "OIH", "NCH"))
        y = y + p["b1"][None, :, None]
        y = jnp.maximum(y, 0.0)
        y = lax.conv_general_dilated(
            y, p["w2"], window_strides=(1,), padding=[(0, 0)],
            dimension_numbers=("NCH", "OIH", "NCH"))
        y = y + p["b2"][None, :, None]
        x = y + x_orig
    return x


if __name__ == "__main__":
    # Resnet1D(n_in=32, n_depth=2, dilation_growth_rate=2,
    #          reverse_dilation=True, activation='relu', norm=None)
    B, C, T = 2, 32, 16
    n_depth = 2
    dilation_growth_rate = 2

    key = jax.random.PRNGKey(0)
    key, kx = jax.random.split(key)
    x = jax.random.normal(kx, (B, C, T), jnp.float32)
    params = init_resnet1d_params(key, n_in=C, n_depth=n_depth,
                                  dilation_growth_rate=dilation_growth_rate,
                                  reverse_dilation=True)

    ref = jax.block_until_ready(resnet1d_ref(x, params))

    # f32 MXU operands + f32 input DMA — exact-ish, strict numerical check.
    out_f32 = jax.block_until_ready(
        resnet1d_pallas(x, params, matmul_dtype=jnp.float32))
    assert out_f32.shape == (B, C, T)
    assert jnp.allclose(out_f32, ref, rtol=1e-5, atol=1e-5), "f32 Pallas mismatch"

    # Default fast path: bf16 MXU operands + bf16 input DMA, f32 accumulation.
    # (Smoke-test tolerance; the strict numerical check is the f32 path above.)
    out_bf16 = jax.block_until_ready(resnet1d_pallas(x, params))
    assert jnp.allclose(out_bf16, ref, rtol=1e-1, atol=1e-1), "bf16 Pallas mismatch"

    # Channels-last (BTC) I/O: skips the wrapper NCT<->NTC transposes.
    out_cl = jax.block_until_ready(
        resnet1d_pallas(jnp.transpose(x, (0, 2, 1)), params,
                        matmul_dtype=jnp.float32, channels_last=True))
    assert jnp.allclose(jnp.transpose(out_cl, (0, 2, 1)), ref,
                        rtol=1e-5, atol=1e-5), "channels_last mismatch"

    # Multi-tile path (T not a multiple of the tile) and a forced 2-way outer
    # "parallel" split: exercises the double-buffered halo'd DMA pipeline, the
    # boundary masking and the megacore grid math on any generation.
    T2 = 80
    key, kx2 = jax.random.split(key)
    x2 = jax.random.normal(kx2, (B, C, T2), jnp.float32)
    ref2 = jax.block_until_ready(resnet1d_ref(x2, params))
    out2 = jax.block_until_ready(
        resnet1d_pallas(x2, params, matmul_dtype=jnp.float32, t_tile=32))
    assert jnp.allclose(out2, ref2, rtol=1e-5, atol=1e-5), "tiled Pallas mismatch"
    out3 = jax.block_until_ready(
        resnet1d_pallas(x2, params, matmul_dtype=jnp.float32, t_tile=32,
                        n_parallel=2))
    assert jnp.allclose(out3, ref2, rtol=1e-5, atol=1e-5), "parallel-split mismatch"

    print("KERNEL_OK")
</pallas_src>

<mosaic_0001>
module attributes {stable_mosaic.version = 11 : i64} {
  func.func @_resnet1d_fused_kernel(%arg0: i32, %arg1: i32, %arg2: memref<2x48x128xf32, #tpu.memory_space<any>>, %arg3: memref<2x384x128xf32, #tpu.memory_space<any>>, %arg4: memref<2x1x128xf32, #tpu.memory_space<any>>, %arg5: memref<2x128x128xf32, #tpu.memory_space<any>>, %arg6: memref<2x1x128xf32, #tpu.memory_space<any>>, %arg7: memref<2x16x128xf32, #tpu.memory_space<vmem>>, %arg8: memref<2x2x48x128xf32, #tpu.memory_space<vmem>>, %arg9: memref<2x!tpu.dma_semaphore, #tpu.memory_space<semaphore_mem>>, %arg10: memref<96x128xf32, #tpu.memory_space<vmem>>, %arg11: memref<2x384x128xf32, #tpu.memory_space<vmem>>, %arg12: memref<2x1x128xf32, #tpu.memory_space<vmem>>, %arg13: memref<2x128x128xf32, #tpu.memory_space<vmem>>, %arg14: memref<2x1x128xf32, #tpu.memory_space<vmem>>, %arg15: memref<4x!tpu.dma_semaphore, #tpu.memory_space<semaphore_mem>>) attributes {dimension_semantics = [#tpu.dimension_semantics<parallel>, #tpu.dimension_semantics<arbitrary>], iteration_bounds = array<i64: 1, 1>, scalar_prefetch = 0 : i64, scratch_operands = 8 : i64, tpu.core_type = #tpu.core_type<tc>, window_params = [{}, {}, {}, {}, {}, {transform_indices = @transform_5, window_bounds = array<i64: 2, 16, 128>}]} {
    %c1_i32 = arith.constant 1 : i32
    %0 = arith.muli %arg0, %c1_i32 : i32
    %1 = arith.addi %0, %arg1 : i32
    %c0_i32 = arith.constant 0 : i32
    %2 = arith.cmpi eq, %arg1, %c0_i32 : i32
    %3 = arith.extui %2 : i1 to i32
    %c0_i32_0 = arith.constant 0 : i32
    %4 = arith.cmpi ne, %3, %c0_i32_0 : i32
    scf.if %4 {
      %c16_i32_75 = arith.constant 16 : i32
      %119 = arith.muli %1, %c16_i32_75 : i32
      %120 = tpu.assume_multiple %119, 16 : i32
      %c0_i32_76 = arith.constant 0 : i32
      %c0_i32_77 = arith.constant 0 : i32
      %c0_i32_78 = arith.constant 0 : i32
      %c0_i32_79 = arith.constant 0 : i32
      %121 = tpu.memref_slice %arg2[%c0_i32_78, %120, %c0_i32_79] : memref<2x48x128xf32, #tpu.memory_space<any>> -> memref<2x48x128xf32, #tpu.memory_space<any>>
      %c0_i32_80 = arith.constant 0 : i32
      %c0_i32_81 = arith.constant 0 : i32
      %c0_i32_82 = arith.constant 0 : i32
      %122 = tpu.memref_slice %arg8[%c0_i32_76, %c0_i32_80, %c0_i32_81, %c0_i32_82] : memref<2x2x48x128xf32, #tpu.memory_space<vmem>> -> memref<1x2x48x128xf32, #tpu.memory_space<vmem>>
      %123 = tpu.memref_squeeze %122 : memref<1x2x48x128xf32, #tpu.memory_space<vmem>> -> memref<2x48x128xf32, #tpu.memory_space<vmem>>
      %124 = tpu.memref_slice %arg9[%c0_i32_77] : memref<2x!tpu.dma_semaphore, #tpu.memory_space<semaphore_mem>> -> memref<1x!tpu.dma_semaphore, #tpu.memory_space<semaphore_mem>>
      %125 = tpu.memref_squeeze %124 : memref<1x!tpu.dma_semaphore, #tpu.memory_space<semaphore_mem>> -> memref<!tpu.dma_semaphore, #tpu.memory_space<semaphore_mem>>
      tpu.enqueue_dma source(%121 : memref<2x48x128xf32, #tpu.memory_space<any>>) target(%123 : memref<2x48x128xf32, #tpu.memory_space<vmem>>) target_semaphore(%125 : memref<!tpu.dma_semaphore, #tpu.memory_space<semaphore_mem>>)
      %c0_i32_83 = arith.constant 0 : i32
      %126 = tpu.memref_slice %arg15[%c0_i32_83] : memref<4x!tpu.dma_semaphore, #tpu.memory_space<semaphore_mem>> -> memref<1x!tpu.dma_semaphore, #tpu.memory_space<semaphore_mem>>
      %127 = tpu.memref_squeeze %126 : memref<1x!tpu.dma_semaphore, #tpu.memory_space<semaphore_mem>> -> memref<!tpu.dma_semaphore, #tpu.memory_space<semaphore_mem>>
      tpu.enqueue_dma source(%arg3 : memref<2x384x128xf32, #tpu.memory_space<any>>) target(%arg11 : memref<2x384x128xf32, #tpu.memory_space<vmem>>) target_semaphore(%127 : memref<!tpu.dma_semaphore, #tpu.memory_space<semaphore_mem>>)
      %c1_i32_84 = arith.constant 1 : i32
      %128 = tpu.memref_slice %arg15[%c1_i32_84] : memref<4x!tpu.dma_semaphore, #tpu.memory_space<semaphore_mem>> -> memref<1x!tpu.dma_semaphore, #tpu.memory_space<semaphore_mem>>
      %129 = tpu.memref_squeeze %128 : memref<1x!tpu.dma_semaphore, #tpu.memory_space<semaphore_mem>> -> memref<!tpu.dma_semaphore, #tpu.memory_space<semaphore_mem>>
      tpu.enqueue_dma source(%arg4 : memref<2x1x128xf32, #tpu.memory_space<any>>) target(%arg12 : memref<2x1x128xf32, #tpu.memory_space<vmem>>) target_semaphore(%129 : memref<!tpu.dma_semaphore, #tpu.memory_space<semaphore_mem>>)
      %c2_i32_85 = arith.constant 2 : i32
      %130 = tpu.memref_slice %arg15[%c2_i32_85] : memref<4x!tpu.dma_semaphore, #tpu.memory_space<semaphore_mem>> -> memref<1x!tpu.dma_semaphore, #tpu.memory_space<semaphore_mem>>
      %131 = tpu.memref_squeeze %130 : memref<1x!tpu.dma_semaphore, #tpu.memory_space<semaphore_mem>> -> memref<!tpu.dma_semaphore, #tpu.memory_space<semaphore_mem>>
      tpu.enqueue_dma source(%arg5 : memref<2x128x128xf32, #tpu.memory_space<any>>) target(%arg13 : memref<2x128x128xf32, #tpu.memory_space<vmem>>) target_semaphore(%131 : memref<!tpu.dma_semaphore, #tpu.memory_space<semaphore_mem>>)
      %c3_i32 = arith.constant 3 : i32
      %132 = tpu.memref_slice %arg15[%c3_i32] : memref<4x!tpu.dma_semaphore, #tpu.memory_space<semaphore_mem>> -> memref<1x!tpu.dma_semaphore, #tpu.memory_space<semaphore_mem>>
      %133 = tpu.memref_squeeze %132 : memref<1x!tpu.dma_semaphore, #tpu.memory_space<semaphore_mem>> -> memref<!tpu.dma_semaphore, #tpu.memory_space<semaphore_mem>>
      tpu.enqueue_dma source(%arg6 : memref<2x1x128xf32, #tpu.memory_space<any>>) target(%arg14 : memref<2x1x128xf32, #tpu.memory_space<vmem>>) target_semaphore(%133 : memref<!tpu.dma_semaphore, #tpu.memory_space<semaphore_mem>>)
      %c0_i32_86 = arith.constant 0 : i32
      %134 = tpu.memref_slice %arg15[%c0_i32_86] : memref<4x!tpu.dma_semaphore, #tpu.memory_space<semaphore_mem>> -> memref<1x!tpu.dma_semaphore, #tpu.memory_space<semaphore_mem>>
      %135 = tpu.memref_squeeze %134 : memref<1x!tpu.dma_semaphore, #tpu.memory_space<semaphore_mem>> -> memref<!tpu.dma_semaphore, #tpu.memory_space<semaphore_mem>>
      tpu.wait_dma2 semaphore(%135 : memref<!tpu.dma_semaphore, #tpu.memory_space<semaphore_mem>>) src(%arg3 : memref<2x384x128xf32, #tpu.memory_space<any>>) dst(%arg11 : memref<2x384x128xf32, #tpu.memory_space<vmem>>)
      %c1_i32_87 = arith.constant 1 : i32
      %136 = tpu.memref_slice %arg15[%c1_i32_87] : memref<4x!tpu.dma_semaphore, #tpu.memory_space<semaphore_mem>> -> memref<1x!tpu.dma_semaphore, #tpu.memory_space<semaphore_mem>>
      %137 = tpu.memref_squeeze %136 : memref<1x!tpu.dma_semaphore, #tpu.memory_space<semaphore_mem>> -> memref<!tpu.dma_semaphore, #tpu.memory_space<semaphore_mem>>
      tpu.wait_dma2 semaphore(%137 : memref<!tpu.dma_semaphore, #tpu.memory_space<semaphore_mem>>) src(%arg4 : memref<2x1x128xf32, #tpu.memory_space<any>>) dst(%arg12 : memref<2x1x128xf32, #tpu.memory_space<vmem>>)
      %c2_i32_88 = arith.constant 2 : i32
      %138 = tpu.memref_slice %arg15[%c2_i32_88] : memref<4x!tpu.dma_semaphore, #tpu.memory_space<semaphore_mem>> -> memref<1x!tpu.dma_semaphore, #tpu.memory_space<semaphore_mem>>
      %139 = tpu.memref_squeeze %138 : memref<1x!tpu.dma_semaphore, #tpu.memory_space<semaphore_mem>> -> memref<!tpu.dma_semaphore, #tpu.memory_space<semaphore_mem>>
      tpu.wait_dma2 semaphore(%139 : memref<!tpu.dma_semaphore, #tpu.memory_space<semaphore_mem>>) src(%arg5 : memref<2x128x128xf32, #tpu.memory_space<any>>) dst(%arg13 : memref<2x128x128xf32, #tpu.memory_space<vmem>>)
      %c3_i32_89 = arith.constant 3 : i32
      %140 = tpu.memref_slice %arg15[%c3_i32_89] : memref<4x!tpu.dma_semaphore, #tpu.memory_space<semaphore_mem>> -> memref<1x!tpu.dma_semaphore, #tpu.memory_space<semaphore_mem>>
      %141 = tpu.memref_squeeze %140 : memref<1x!tpu.dma_semaphore, #tpu.memory_space<semaphore_mem>> -> memref<!tpu.dma_semaphore, #tpu.memory_space<semaphore_mem>>
      tpu.wait_dma2 semaphore(%141 : memref<!tpu.dma_semaphore, #tpu.memory_space<semaphore_mem>>) src(%arg6 : memref<2x1x128xf32, #tpu.memory_space<any>>) dst(%arg14 : memref<2x1x128xf32, #tpu.memory_space<vmem>>)
    } else {
    }
    %c2_i32 = arith.constant 2 : i32
    %c0_i32_1 = arith.constant 0 : i32
    %5 = arith.cmpi eq, %c2_i32, %c0_i32_1 : i32
    %c1_i32_2 = arith.constant 1 : i32
    %6 = arith.select %5, %c1_i32_2, %c2_i32 : i32
    %7 = arith.remsi %arg1, %6 : i32
    %c0_i32_3 = arith.constant 0 : i32
    %8 = arith.cmpi ne, %7, %c0_i32_3 : i32
    %c0_i32_4 = arith.constant 0 : i32
    %9 = arith.cmpi slt, %7, %c0_i32_4 : i32
    %c0_i32_5 = arith.constant 0 : i32
    %10 = arith.cmpi slt, %6, %c0_i32_5 : i32
    %11 = arith.xori %9, %10 : i1
    %12 = arith.andi %11, %8 : i1
    %13 = arith.addi %7, %6 : i32
    %14 = arith.select %12, %13, %7 : i32
    %c1_i32_6 = arith.constant 1 : i32
    %15 = arith.addi %arg1, %c1_i32_6 : i32
    %c1_i32_7 = arith.constant 1 : i32
    %16 = arith.cmpi slt, %15, %c1_i32_7 : i32
    %17 = arith.extui %16 : i1 to i32
    %c0_i32_8 = arith.constant 0 : i32
    %18 = arith.cmpi ne, %17, %c0_i32_8 : i32
    scf.if %18 {
      %c1_i32_75 = arith.constant 1 : i32
      %119 = arith.addi %1, %c1_i32_75 : i32
      %c1_i32_76 = arith.constant 1 : i32
      %120 = arith.subi %c1_i32_76, %14 : i32
      %c16_i32_77 = arith.constant 16 : i32
      %121 = arith.muli %119, %c16_i32_77 : i32
      %122 = tpu.assume_multiple %121, 16 : i32
      %c0_i32_78 = arith.constant 0 : i32
      %c0_i32_79 = arith.constant 0 : i32
      %123 = tpu.memref_slice %arg2[%c0_i32_78, %122, %c0_i32_79] : memref<2x48x128xf32, #tpu.memory_space<any>> -> memref<2x48x128xf32, #tpu.memory_space<any>>
      %c0_i32_80 = arith.constant 0 : i32
      %c0_i32_81 = arith.constant 0 : i32
      %c0_i32_82 = arith.constant 0 : i32
      %124 = tpu.memref_slice %arg8[%120, %c0_i32_80, %c0_i32_81, %c0_i32_82] : memref<2x2x48x128xf32, #tpu.memory_space<vmem>> -> memref<1x2x48x128xf32, #tpu.memory_space<vmem>>
      %125 = tpu.memref_squeeze %124 : memref<1x2x48x128xf32, #tpu.memory_space<vmem>> -> memref<2x48x128xf32, #tpu.memory_space<vmem>>
      %126 = tpu.memref_slice %arg9[%120] : memref<2x!tpu.dma_semaphore, #tpu.memory_space<semaphore_mem>> -> memref<1x!tpu.dma_semaphore, #tpu.memory_space<semaphore_mem>>
      %127 = tpu.memref_squeeze %126 : memref<1x!tpu.dma_semaphore, #tpu.memory_space<semaphore_mem>> -> memref<!tpu.dma_semaphore, #tpu.memory_space<semaphore_mem>>
      tpu.enqueue_dma source(%123 : memref<2x48x128xf32, #tpu.memory_space<any>>) target(%125 : memref<2x48x128xf32, #tpu.memory_space<vmem>>) target_semaphore(%127 : memref<!tpu.dma_semaphore, #tpu.memory_space<semaphore_mem>>)
    } else {
    }
    %c16_i32 = arith.constant 16 : i32
    %19 = arith.muli %1, %c16_i32 : i32
    %20 = tpu.assume_multiple %19, 16 : i32
    %c0_i32_9 = arith.constant 0 : i32
    %c0_i32_10 = arith.constant 0 : i32
    %21 = tpu.memref_slice %arg2[%c0_i32_9, %20, %c0_i32_10] : memref<2x48x128xf32, #tpu.memory_space<any>> -> memref<2x48x128xf32, #tpu.memory_space<any>>
    %c0_i32_11 = arith.constant 0 : i32
    %c0_i32_12 = arith.constant 0 : i32
    %c0_i32_13 = arith.constant 0 : i32
    %22 = tpu.memref_slice %arg8[%14, %c0_i32_11, %c0_i32_12, %c0_i32_13] : memref<2x2x48x128xf32, #tpu.memory_space<vmem>> -> memref<1x2x48x128xf32, #tpu.memory_space<vmem>>
    %23 = tpu.memref_squeeze %22 : memref<1x2x48x128xf32, #tpu.memory_space<vmem>> -> memref<2x48x128xf32, #tpu.memory_space<vmem>>
    %24 = tpu.memref_slice %arg9[%14] : memref<2x!tpu.dma_semaphore, #tpu.memory_space<semaphore_mem>> -> memref<1x!tpu.dma_semaphore, #tpu.memory_space<semaphore_mem>>
    %25 = tpu.memref_squeeze %24 : memref<1x!tpu.dma_semaphore, #tpu.memory_space<semaphore_mem>> -> memref<!tpu.dma_semaphore, #tpu.memory_space<semaphore_mem>>
    tpu.wait_dma2 semaphore(%25 : memref<!tpu.dma_semaphore, #tpu.memory_space<semaphore_mem>>) src(%21 : memref<2x48x128xf32, #tpu.memory_space<any>>) dst(%23 : memref<2x48x128xf32, #tpu.memory_space<vmem>>)
    %26 = arith.index_cast %14 : i32 to index
    %c0 = arith.constant 0 : index
    %c0_14 = arith.constant 0 : index
    %c0_15 = arith.constant 0 : index
    %27 = vector.load %arg8[%26, %c0, %c0_14, %c0_15] : memref<2x2x48x128xf32, #tpu.memory_space<vmem>>, vector<1x2x48x128xf32>
    %28 = vector.shape_cast %27 : vector<1x2x48x128xf32> to vector<2x48x128xf32>
    %29 = vector.shape_cast %28 : vector<2x48x128xf32> to vector<96x128xf32>
    %c0_16 = arith.constant 0 : index
    %c0_17 = arith.constant 0 : index
    %30 = vector.load %arg10[%c0_16, %c0_17] : memref<96x128xf32, #tpu.memory_space<vmem>>, vector<96x128xf32>
    tpu.vector_store %arg10[%c0_16, %c0_17], %29 {strides = array<i32>} : memref<96x128xf32, #tpu.memory_space<vmem>>, vector<96x128xf32>,
    %31 = tpu.iota {dimensions = array<i32: 0>} : vector<96x1xi32>
    %c48_i32 = arith.constant 48 : i32
    %c0_i32_18 = arith.constant 0 : i32
    %32 = arith.cmpi eq, %c48_i32, %c0_i32_18 : i32
    %c1_i32_19 = arith.constant 1 : i32
    %33 = arith.select %32, %c1_i32_19, %c48_i32 : i32
    %34 = vector.broadcast %33 : i32 to vector<96x1xi32>
    %35 = arith.remsi %31, %34 : vector<96x1xi32>
    %c0_i32_20 = arith.constant 0 : i32
    %36 = vector.broadcast %c0_i32_20 : i32 to vector<96x1xi32>
    %37 = arith.cmpi ne, %35, %36 : vector<96x1xi32>
    %c0_i32_21 = arith.constant 0 : i32
    %38 = vector.broadcast %c0_i32_21 : i32 to vector<96x1xi32>
    %39 = arith.cmpi slt, %35, %38 : vector<96x1xi32>
    %c0_i32_22 = arith.constant 0 : i32
    %40 = arith.cmpi slt, %33, %c0_i32_22 : i32
    %41 = vector.broadcast %40 : i1 to vector<96x1xi1>
    %42 = vector.broadcast %41 : vector<96x1xi1> to vector<96x1xi1>
    %43 = arith.xori %39, %42 : vector<96x1xi1>
    %44 = arith.andi %43, %37 : vector<96x1xi1>
    %45 = vector.broadcast %33 : i32 to vector<96x1xi32>
    %46 = arith.addi %35, %45 : vector<96x1xi32>
    %47 = arith.select %44, %46, %35 : vector<96x1xi1>, vector<96x1xi32>
    %c16_i32_23 = arith.constant 16 : i32
    %48 = arith.muli %1, %c16_i32_23 : i32
    %c16_i32_24 = arith.constant 16 : i32
    %49 = arith.subi %48, %c16_i32_24 : i32
    %50 = vector.broadcast %49 : i32 to vector<96x1xi32>
    %51 = arith.addi %50, %47 : vector<96x1xi32>
    %c0_i32_25 = arith.constant 0 : i32
    %52 = vector.broadcast %c0_i32_25 : i32 to vector<96x1xi32>
    %53 = arith.cmpi sge, %51, %52 : vector<96x1xi32>
    %c16_i32_26 = arith.constant 16 : i32
    %54 = vector.broadcast %c16_i32_26 : i32 to vector<96x1xi32>
    %55 = arith.cmpi slt, %51, %54 : vector<96x1xi32>
    %56 = arith.andi %53, %55 : vector<96x1xi1>
    %57 = arith.extui %56 : vector<96x1xi1> to vector<96x1xi32>
    %58 = arith.sitofp %57 : vector<96x1xi32> to vector<96x1xf32>
    %c0_27 = arith.constant 0 : index
    %c0_28 = arith.constant 0 : index
    %59 = vector.load %arg10[%c0_27, %c0_28] : memref<96x128xf32, #tpu.memory_space<vmem>>, vector<96x128xf32>
    %cst = arith.constant 0.000000e+00 : f32
    %60 = vector.broadcast %cst : f32 to vector<96x128xf32>
    %61 = arith.maximumf %59, %60 : vector<96x128xf32>
    %62 = vector.broadcast %58 : vector<96x1xf32> to vector<96x128xf32>
    %63 = arith.mulf %61, %62 : vector<96x128xf32>
    %c2_i32_29 = arith.constant 2 : i32
    %64 = tpu.dynamic_rotate %63 by %c2_i32_29 dim 0 : vector<96x128xf32>, i32 -> vector<96x128xf32>
    %c94_i32 = arith.constant 94 : i32
    %65 = tpu.dynamic_rotate %63 by %c94_i32 dim 0 : vector<96x128xf32>, i32 -> vector<96x128xf32>
    %66 = tpu.concatenate %64, %63, %65 in 1 : vector<96x128xf32>, vector<96x128xf32>, vector<96x128xf32> -> vector<96x384xf32>
    %c0_30 = arith.constant 0 : index
    %c0_31 = arith.constant 0 : index
    %c0_32 = arith.constant 0 : index
    %67 = vector.load %arg11[%c0_30, %c0_31, %c0_32] : memref<2x384x128xf32, #tpu.memory_space<vmem>>, vector<1x384x128xf32>
    %68 = vector.shape_cast %67 : vector<1x384x128xf32> to vector<384x128xf32>
    %cst_33 = arith.constant dense<0.000000e+00> : vector<96x128xf32>
    %69 = tpu.matmul %66, %68, %cst_33 {dimension_numbers = #tpu.dot_dimension_numbers<[1], [0], [0], [1], [0, 0, 1, 1], [], []>} : vector<96x384xf32>, vector<384x128xf32>, vector<96x128xf32> -> vector<96x128xf32>
    %c0_34 = arith.constant 0 : index
    %c0_35 = arith.constant 0 : index
    %c0_36 = arith.constant 0 : index
    %70 = vector.load %arg12[%c0_34, %c0_35, %c0_36] : memref<2x1x128xf32, #tpu.memory_space<vmem>>, vector<1x1x128xf32>
    %71 = vector.shape_cast %70 : vector<1x1x128xf32> to vector<1x128xf32>
    %72 = vector.broadcast %71 : vector<1x128xf32> to vector<96x128xf32>
    %73 = arith.addf %69, %72 : vector<96x128xf32>
    %cst_37 = arith.constant 0.000000e+00 : f32
    %74 = vector.broadcast %cst_37 : f32 to vector<96x128xf32>
    %75 = arith.maximumf %73, %74 : vector<96x128xf32>
    %c0_38 = arith.constant 0 : index
    %c0_39 = arith.constant 0 : index
    %c0_40 = arith.constant 0 : index
    %76 = vector.load %arg13[%c0_38, %c0_39, %c0_40] : memref<2x128x128xf32, #tpu.memory_space<vmem>>, vector<1x128x128xf32>
    %77 = vector.shape_cast %76 : vector<1x128x128xf32> to vector<128x128xf32>
    %cst_41 = arith.constant dense<0.000000e+00> : vector<96x128xf32>
    %78 = tpu.matmul %75, %77, %cst_41 {dimension_numbers = #tpu.dot_dimension_numbers<[1], [0], [0], [1], [0, 0, 1, 1], [], []>} : vector<96x128xf32>, vector<128x128xf32>, vector<96x128xf32> -> vector<96x128xf32>
    %c0_42 = arith.constant 0 : index
    %c0_43 = arith.constant 0 : index
    %c0_44 = arith.constant 0 : index
    %79 = vector.load %arg14[%c0_42, %c0_43, %c0_44] : memref<2x1x128xf32, #tpu.memory_space<vmem>>, vector<1x1x128xf32>
    %80 = vector.shape_cast %79 : vector<1x1x128xf32> to vector<1x128xf32>
    %81 = vector.broadcast %80 : vector<1x128xf32> to vector<96x128xf32>
    %82 = arith.addf %78, %81 : vector<96x128xf32>
    %83 = arith.addf %59, %82 : vector<96x128xf32>
    %c0_45 = arith.constant 0 : index
    %c0_46 = arith.constant 0 : index
    %84 = vector.load %arg10[%c0_45, %c0_46] : memref<96x128xf32, #tpu.memory_space<vmem>>, vector<96x128xf32>
    tpu.vector_store %arg10[%c0_45, %c0_46], %83 {strides = array<i32>} : memref<96x128xf32, #tpu.memory_space<vmem>>, vector<96x128xf32>,
    %c0_47 = arith.constant 0 : index
    %c0_48 = arith.constant 0 : index
    %85 = vector.load %arg10[%c0_47, %c0_48] : memref<96x128xf32, #tpu.memory_space<vmem>>, vector<96x128xf32>
    %cst_49 = arith.constant 0.000000e+00 : f32
    %86 = vector.broadcast %cst_49 : f32 to vector<96x128xf32>
    %87 = arith.maximumf %85, %86 : vector<96x128xf32>
    %88 = vector.broadcast %58 : vector<96x1xf32> to vector<96x128xf32>
    %89 = arith.mulf %87, %88 : vector<96x128xf32>
    %c1_i32_50 = arith.constant 1 : i32
    %90 = tpu.dynamic_rotate %89 by %c1_i32_50 dim 0 : vector<96x128xf32>, i32 -> vector<96x128xf32>
    %c95_i32 = arith.constant 95 : i32
    %91 = tpu.dynamic_rotate %89 by %c95_i32 dim 0 : vector<96x128xf32>, i32 -> vector<96x128xf32>
    %92 = tpu.concatenate %90, %89, %91 in 1 : vector<96x128xf32>, vector<96x128xf32>, vector<96x128xf32> -> vector<96x384xf32>
    %c1 = arith.constant 1 : index
    %c0_51 = arith.constant 0 : index
    %c0_52 = arith.constant 0 : index
    %93 = vector.load %arg11[%c1, %c0_51, %c0_52] : memref<2x384x128xf32, #tpu.memory_space<vmem>>, vector<1x384x128xf32>
    %94 = vector.shape_cast %93 : vector<1x384x128xf32> to vector<384x128xf32>
    %cst_53 = arith.constant dense<0.000000e+00> : vector<96x128xf32>
    %95 = tpu.matmul %92, %94, %cst_53 {dimension_numbers = #tpu.dot_dimension_numbers<[1], [0], [0], [1], [0, 0, 1, 1], [], []>} : vector<96x384xf32>, vector<384x128xf32>, vector<96x128xf32> -> vector<96x128xf32>
    %c1_54 = arith.constant 1 : index
    %c0_55 = arith.constant 0 : index
    %c0_56 = arith.constant 0 : index
    %96 = vector.load %arg12[%c1_54, %c0_55, %c0_56] : memref<2x1x128xf32, #tpu.memory_space<vmem>>, vector<1x1x128xf32>
    %97 = vector.shape_cast %96 : vector<1x1x128xf32> to vector<1x128xf32>
    %98 = vector.broadcast %97 : vector<1x128xf32> to vector<96x128xf32>
    %99 = arith.addf %95, %98 : vector<96x128xf32>
    %cst_57 = arith.constant 0.000000e+00 : f32
    %100 = vector.broadcast %cst_57 : f32 to vector<96x128xf32>
    %101 = arith.maximumf %99, %100 : vector<96x128xf32>
    %c1_58 = arith.constant 1 : index
    %c0_59 = arith.constant 0 : index
    %c0_60 = arith.constant 0 : index
    %102 = vector.load %arg13[%c1_58, %c0_59, %c0_60] : memref<2x128x128xf32, #tpu.memory_space<vmem>>, vector<1x128x128xf32>
    %103 = vector.shape_cast %102 : vector<1x128x128xf32> to vector<128x128xf32>
    %cst_61 = arith.constant dense<0.000000e+00> : vector<96x128xf32>
    %104 = tpu.matmul %101, %103, %cst_61 {dimension_numbers = #tpu.dot_dimension_numbers<[1], [0], [0], [1], [0, 0, 1, 1], [], []>} : vector<96x128xf32>, vector<128x128xf32>, vector<96x128xf32> -> vector<96x128xf32>
    %c1_62 = arith.constant 1 : index
    %c0_63 = arith.constant 0 : index
    %c0_64 = arith.constant 0 : index
    %105 = vector.load %arg14[%c1_62, %c0_63, %c0_64] : memref<2x1x128xf32, #tpu.memory_space<vmem>>, vector<1x1x128xf32>
    %106 = vector.shape_cast %105 : vector<1x1x128xf32> to vector<1x128xf32>
    %107 = vector.broadcast %106 : vector<1x128xf32> to vector<96x128xf32>
    %108 = arith.addf %104, %107 : vector<96x128xf32>
    %109 = arith.addf %85, %108 : vector<96x128xf32>
    %c0_65 = arith.constant 0 : index
    %c0_66 = arith.constant 0 : index
    %110 = vector.load %arg10[%c0_65, %c0_66] : memref<96x128xf32, #tpu.memory_space<vmem>>, vector<96x128xf32>
    tpu.vector_store %arg10[%c0_65, %c0_66], %109 {strides = array<i32>} : memref<96x128xf32, #tpu.memory_space<vmem>>, vector<96x128xf32>,
    %c16 = arith.constant 16 : index
    %c0_67 = arith.constant 0 : index
    %111 = vector.load %arg10[%c16, %c0_67] : memref<96x128xf32, #tpu.memory_space<vmem>>, vector<16x128xf32>
    %c0_68 = arith.constant 0 : index
    %c0_69 = arith.constant 0 : index
    %c0_70 = arith.constant 0 : index
    %112 = vector.load %arg7[%c0_68, %c0_69, %c0_70] : memref<2x16x128xf32, #tpu.memory_space<vmem>>, vector<1x16x128xf32>
    %113 = vector.shape_cast %112 : vector<1x16x128xf32> to vector<16x128xf32>
    %114 = vector.shape_cast %111 : vector<16x128xf32> to vector<1x16x128xf32>
    tpu.vector_store %arg7[%c0_68, %c0_69, %c0_70], %114 {strides = array<i32>} : memref<2x16x128xf32, #tpu.memory_space<vmem>>, vector<1x16x128xf32>,
    %c64 = arith.constant 64 : index
    %c0_71 = arith.constant 0 : index
    %115 = vector.load %arg10[%c64, %c0_71] : memref<96x128xf32, #tpu.memory_space<vmem>>, vector<16x128xf32>
    %c1_72 = arith.constant 1 : index
    %c0_73 = arith.constant 0 : index
    %c0_74 = arith.constant 0 : index
    %116 = vector.load %arg7[%c1_72, %c0_73, %c0_74] : memref<2x16x128xf32, #tpu.memory_space<vmem>>, vector<1x16x128xf32>
    %117 = vector.shape_cast %116 : vector<1x16x128xf32> to vector<16x128xf32>
    %118 = vector.shape_cast %115 : vector<16x128xf32> to vector<1x16x128xf32>
    tpu.vector_store %arg7[%c1_72, %c0_73, %c0_74], %118 {strides = array<i32>} : memref<2x16x128xf32, #tpu.memory_space<vmem>>, vector<1x16x128xf32>,
    return
  }
  func.func @transform_5(%arg0: i32, %arg1: i32) -> (i32, i32, i32) {
    %c1_i32 = arith.constant 1 : i32
    %0 = arith.muli %arg0, %c1_i32 : i32
    %1 = arith.addi %0, %arg1 : i32
    %c0_i32 = arith.constant 0 : i32
    %c0_i32_0 = arith.constant 0 : i32
    %c0_i32_1 = arith.constant 0 : i32
    return %c0_i32, %1, %c0_i32_0 : i32, i32, i32
  }
}

</mosaic_0001>

<bundles_post_ra>
// kernel: tpu_custom_call.1
= control target key start
LH: loop header
LB: loop body
LE: loop exit
PB: predicated region body
PF: predicated region fallthrough
CT: control target
= control target key end

     0   :  { %10 = vsyncpa [#allocation11], 0  ;;  %s2526_s18 = smov [#allocation5]   ;;  %s2527_s20 = smov [#allocation6]   ;;  %s3270_s0 = inlined_call_operand.hbm [shape: f32[2,48,128], index: 0, kind: input, shape index: {}]   ;;  %s3271_s1 = inlined_call_operand.hbm [shape: f32[2,384,128], index: 1, kind: input, shape index: {}]   ;;  %s3272_s2 = inlined_call_operand.hbm [shape: f32[2,1,128], index: 2, kind: input, shape index: {}]   ;;  %s3273_s3 = inlined_call_operand.hbm [shape: f32[2,128,128], index: 3, kind: input, shape index: {}]   ;;  %s3274_s4 = inlined_call_operand.hbm [shape: f32[2,1,128], index: 4, kind: input, shape index: {}]   ;;  %s3275_s5 = inlined_call_operand.hbm [shape: f32[2,16,128], index: 5, kind: output, shape index: {}]  }
   0x1   :  { %s39_s19 = sshll.u32 %s2526_s18, 4  ;;  %s51_s21 = sshll.u32 %s2527_s20, 4  ;;  %s40_s19 = int_to_ptr.vmem [resolvable:$true] %s39_s19  ;;  %s52_s21 = int_to_ptr.vmem [resolvable:$true] %s51_s21 }
   0x2   :  { %s2382_s24 = scalar_lea.hbm %s3271_s1, 12288 }
   0x3   :  { %p2383_p0 = scmp.ne.s32.totalorder %s3271_s1, %s2382_s24  ;;  %p2386_p1 = scmp.lt.u32.totalorder %s2382_s24, %s3271_s1 }
   0x5   :  { %p2388_p2 = pnand %p2386_p1, %p2383_p0 }
   0x7   :  { %2391 = shalt.err (!%p2388_p2)  }
   0x8   :  { %s2392_s29 = scalar_lea.vmem %s40_s19, 12288  ;;  %p2397_p4 = scmp.lt.s32.totalorder %s40_s19, %s40_s19 }
   0x9   :  { %p2393_p3 = scmp.ne.s32.totalorder %s40_s19, %s2392_s29  ;;  %p2398_p5 = scmp.lt.s32.totalorder %s2392_s29, %s2392_s29 }
   0xb   :  { %p2399_p6 = por %p2398_p5, %p2397_p4 }
   0xd   :  { %p2400_p7 = pnand %p2399_p6, %p2393_p3 }
   0xf   :  { %2403 = shalt.err (!%p2400_p7)  }
  0x10   :  { %42 = dma.hbm_to_vmem [thread:$0]  %s3271_s1, 12288, %s40_s19, [#allocation9] }
  0x11   :  { %s2404_s9 = scalar_lea.hbm %s3272_s2, 32 }
  0x12   :  { %p2405_p8 = scmp.ne.s32.totalorder %s3272_s2, %s2404_s9  ;;  %p2408_p9 = scmp.lt.u32.totalorder %s2404_s9, %s3272_s2 }
  0x14   :  { %p2410_p10 = pnand %p2408_p9, %p2405_p8 }
  0x16   :  { %2413 = shalt.err (!%p2410_p10)  }
  0x17   :  { %s2414_s14 = scalar_lea.vmem %s52_s21, 32  ;;  %p2419_p12 = scmp.lt.s32.totalorder %s52_s21, %s52_s21 }
  0x18   :  { %p2415_p11 = scmp.ne.s32.totalorder %s52_s21, %s2414_s14  ;;  %p2420_p13 = scmp.lt.s32.totalorder %s2414_s14, %s2414_s14 }
  0x1a   :  { %p2421_p0 = por %p2420_p13, %p2419_p12 }
  0x1c   :  { %p2422_p1 = pnand %p2421_p0, %p2415_p11 }
  0x1e   :  { %2425 = shalt.err (!%p2422_p1)  }
  0x1f   :  { %54 = dma.hbm_to_vmem [thread:$0]  %s3272_s2, 32, %s52_s21, [#allocation9 + $0x1] }
  0x20   :  { %s2528_s16 = smov [#allocation7]   ;;  %s2529_s18 = smov [#allocation2]  }
  0x21   :  { %s63_s17 = sshll.u32 %s2528_s16, 4  ;;  %s28_s19 = sshll.u32 %s2529_s18, 4  ;;  %s64_s17 = int_to_ptr.vmem [resolvable:$true] %s63_s17  ;;  %s29_s19 = int_to_ptr.vmem [resolvable:$true] %s28_s19 }
  0x22   :  { %s2426_s23 = scalar_lea.hbm %s3273_s3, 4096 }
  0x23   :  { %p2427_p2 = scmp.ne.s32.totalorder %s3273_s3, %s2426_s23  ;;  %p2430_p3 = scmp.lt.u32.totalorder %s2426_s23, %s3273_s3 }
  0x25   :  { %p2432_p4 = pnand %p2430_p3, %p2427_p2 }
  0x27   :  { %2435 = shalt.err (!%p2432_p4)  }
  0x28   :  { %s2436_s2 = scalar_lea.vmem %s64_s17, 4096  ;;  %p2441_p6 = scmp.lt.s32.totalorder %s64_s17, %s64_s17 }
  0x29   :  { %p2437_p5 = scmp.ne.s32.totalorder %s64_s17, %s2436_s2  ;;  %p2442_p7 = scmp.lt.s32.totalorder %s2436_s2, %s2436_s2 }
  0x2b   :  { %p2443_p8 = por %p2442_p7, %p2441_p6 }
  0x2d   :  { %p2444_p9 = pnand %p2443_p8, %p2437_p5 }
  0x2f   :  { %2447 = shalt.err (!%p2444_p9)  }
  0x30   :  { %66 = dma.hbm_to_vmem [thread:$0]  %s3273_s3, 4096, %s64_s17, [#allocation9 + $0x2] }
  0x31   :  { %s2448_s6 = scalar_lea.hbm %s3270_s0, 1536 }
  0x32   :  { %p2449_p10 = scmp.ne.s32.totalorder %s3270_s0, %s2448_s6  ;;  %p2452_p11 = scmp.lt.u32.totalorder %s2448_s6, %s3270_s0 }
  0x34   :  { %p2454_p12 = pnand %p2452_p11, %p2449_p10 }
  0x36   :  { %2457 = shalt.err (!%p2454_p12)  }
  0x37   :  { %s2458_s11 = scalar_lea.vmem %s29_s19, 1536  ;;  %s2462_s12 = scalar_lea.vmem %s29_s19, 3072 }
  0x38   :  { %p2459_p13 = scmp.ne.s32.totalorder %s29_s19, %s2458_s11  ;;  %p2463_p0 = scmp.lt.s32.totalorder %s29_s19, %s29_s19 }
  0x39   :  { %p2464_p1 = scmp.lt.s32.totalorder %s2462_s12, %s2458_s11 }
  0x3b   :  { %p2465_p2 = por %p2464_p1, %p2463_p0 }
  0x3d   :  { %p2466_p3 = pnand %p2465_p2, %p2459_p13 }
  0x3f   :  { %2469 = shalt.err (!%p2466_p3)  }
  0x40   :  { %31 = dma.hbm_to_vmem [thread:$0]  %s3270_s0, 1536, %s29_s19, [#allocation3] }
  0x41   :  { %s2530_s14 = smov [#allocation8]   ;;  %s2470_s17 = scalar_lea.hbm %s3274_s4, 32 }
  0x42   :  { %s75_s1 = sshll.u32 %s2530_s14, 4  ;;  %p2471_p4 = scmp.ne.s32.totalorder %s3274_s4, %s2470_s17  ;;  %s76_s1 = int_to_ptr.vmem [resolvable:$true] %s75_s1 }
  0x43   :  { %p2474_p5 = scmp.lt.u32.totalorder %s2470_s17, %s3274_s4 }
  0x45   :  { %p2476_p6 = pnand %p2474_p5, %p2471_p4 }
  0x47   :  { %2479 = shalt.err (!%p2476_p6)  }
  0x48   :  { %s2480_s24 = scalar_lea.vmem %s76_s1, 32  ;;  %p2485_p8 = scmp.lt.s32.totalorder %s76_s1, %s76_s1 }
  0x49   :  { %p2481_p7 = scmp.ne.s32.totalorder %s76_s1, %s2480_s24  ;;  %p2486_p9 = scmp.lt.s32.totalorder %s2480_s24, %s2480_s24 }
  0x4b   :  { %p2487_p10 = por %p2486_p9, %p2485_p8 }
  0x4d   :  { %p2488_p11 = pnand %p2487_p10, %p2481_p7 }
  0x4f   :  { %2491 = shalt.err (!%p2488_p11)  }
  0x50   :  { %78 = dma.hbm_to_vmem [thread:$0]  %s3274_s4, 32, %s76_s1, [#allocation9 + $0x3] }
  0x51   :  { %2514 = dma.done.wait [#allocation9], 12288 }
  0x52   :  { %2515 = vsyncadd [#allocation9], 4294955008 }
  0x53   :  { %2516 = dma.done.wait [#allocation9 + $0x1], 32 }
  0x54   :  { %2517 = vsyncadd [#allocation9 + $0x1], 4294967264 }
  0x55   :  { %2518 = dma.done.wait [#allocation9 + $0x2], 4096 }
  0x56   :  { %2519 = vsyncadd [#allocation9 + $0x2], 4294963200 }
  0x57   :  { %2520 = dma.done.wait [#allocation9 + $0x3], 32 }
  0x58   :  { %2521 = vsyncadd [#allocation9 + $0x3], 4294967264 }
  0x59   :  { %2522 = dma.done.wait [#allocation3], 1536 }
  0x5a   :  { %2523 = vsyncadd [#allocation3], 4294965760  ;;  %v157_v0 = vlaneseq  ;;  %v538_v10 = vld [vmem:[#allocation5 + $0x80] sm:$0xff]  ;;  %v539_v11 = vld [vmem:[#allocation5 + $0x88] sm:$0xff]  ;;  %s2532_s4 = smov [#allocation10]  }
  0x5b   :  { %v522_v12 = vld [vmem:[#allocation5] sm:$0xff]  ;;  %v2136_v16 = vpack.c.bf16 %v539_v11, %v538_v10  ;;  %v523_v17 = vld [vmem:[#allocation5 + $0x8] sm:$0xff]  ;;  %v540_v18 = vld [vmem:[#allocation5 + $0x90] sm:$0xff]  ;;  %s1608_s25 = sshll.u32 %s2532_s4, 4  ;;  %s1609_s25 = int_to_ptr.vmem [resolvable:$true] %s1608_s25 }
  0x5c   :  { %v2625_v1 = vshrl.u32 %v157_v0, 7  ;;  %v541_v19 = vld [vmem:[#allocation5 + $0x98] sm:$0xff]  ;;  %v2138_v23 = vpack.c.bf16 %v523_v17, %v522_v12  ;;  %v554_v25 = vld [vmem:[#allocation5 + $0x100] sm:$0xff]  ;;  %v555_v26 = vld [vmem:[#allocation5 + $0x108] sm:$0xff]  ;;  %s2492_s26 = scalar_lea.vmem %s1609_s25, 512  ;;  %p2497_p13 = scmp.lt.s32.totalorder %s1609_s25, %s1609_s25 }
  0x5d   :  { %v2140_v24 = vpack.c.bf16 %v541_v19, %v540_v18  ;;  %v524_v27 = vld [vmem:[#allocation5 + $0x10] sm:$0xff]  ;;  %2137 = vmatprep.subr.bf16.mxu0 %v2136_v16  ;;  %v2168_v30 = vpack.c.bf16 %v555_v26, %v554_v25  ;;  %v525_v31 = vld [vmem:[#allocation5 + $0x18] sm:$0xff]  ;;  %v542_v32 = vld [vmem:[#allocation5 + $0xa0] sm:$0xff]  ;;  %p2493_p12 = scmp.ne.s32.totalorder %s1609_s25, %s2492_s26  ;;  %p2498_p0 = scmp.lt.s32.totalorder %s2492_s26, %s2492_s26 }
  0x5e   :  { %v2628_v2 = vmul.u32.u64.low 2863311531, %v2625_v1  ;;  %v2629_v3 = vmul.u32.u64.high 2863311531, %v2625_v1, %v2628_v2  ;;  %v2632_v4 = vadd.s32 88, %v2625_v1  ;;  %v2635_v5 = vadd.s32 8, %v2625_v1  ;;  %v543_v33 = vld [vmem:[#allocation5 + $0xa8] sm:$0xff]  ;;  %2139 = vmatpush3.bf16.msra.mxu0 %v2138_v23  ;;  %v556_v39 = vld [vmem:[#allocation5 + $0x110] sm:$0xff] }
  0x5f   :  { %v2638_v6 = vadd.s32 16, %v2625_v1  ;;  %v2641_v7 = vadd.s32 24, %v2625_v1  ;;  %v2652_v15 = vadd.s32 32, %v2625_v1  ;;  %v2665_v36 = vadd.s32 40, %v2625_v1  ;;  %v557_v40 = vld [vmem:[#allocation5 + $0x118] sm:$0xff]  ;;  %v526_v41 = vld [vmem:[#allocation5 + $0x20] sm:$0xff]  ;;  %2141 = vmatprep.subr.bf16.mxu0 %v2140_v24  ;;  %2169 = vmatprep.subr.bf16.mxu1 %v2168_v30  ;;  %p2499_p1 = por %p2498_p0, %p2497_p13 }
  0x60   :  { %v2644_v8 = vmul.u32.u64.low 2863311531, %v2632_v4  ;;  %v2645_v9 = vmul.u32.u64.high 2863311531, %v2632_v4, %v2644_v8  ;;  %v2648_v13 = vmul.u32.u64.low 2863311531, %v2635_v5  ;;  %v2649_v14 = vmul.u32.u64.high 2863311531, %v2635_v5, %v2648_v13  ;;  %v527_v45 = vld [vmem:[#allocation5 + $0x28] sm:$0xff]  ;;  %v544_v46 = vld [vmem:[#allocation5 + $0xb0] sm:$0xff]  ;;  %2171 = vmatpush3.bf16.msra.mxu1 %v2168_v30 }
  0x61   :  { %v176_v20 = vshrl.u32 %v2629_v3, 5  ;;  %v2656_v21 = vmul.u32.u64.low 2863311531, %v2638_v6  ;;  %v2657_v22 = vmul.u32.u64.high 2863311531, %v2638_v6, %v2656_v21  ;;  %v2142_v37 = vpack.c.bf16 %v525_v31, %v524_v27  ;;  %v545_v47 = vld [vmem:[#allocation5 + $0xb8] sm:$0xff]  ;;  %v558_v51 = vld [vmem:[#allocation5 + $0x120] sm:$0xff]  ;;  %v559_v52 = vld [vmem:[#allocation5 + $0x128] sm:$0xff]  ;;  %p2500_p2 = pnand %p2499_p1, %p2493_p12 }
  0x62   :  { %v2660_v28 = vmul.u32.u64.low 2863311531, %v2641_v7  ;;  %v2661_v29 = vmul.u32.u64.high 2863311531, %v2641_v7, %v2660_v28  ;;  %v297_v35 = vshrl.u32 %v2645_v9, 5  ;;  %v2144_v38 = vpack.c.bf16 %v543_v33, %v542_v32  ;;  %v2675_v53 = vld [vmem:[#allocation5 + $0x30] sm:$0xff]  ;;  %v2681_v60 = vld [vmem:[#allocation5 + $0x38] sm:$0xff]  ;;  %v2683_v61 = vld [vmem:[#allocation5 + $0xc0] sm:$0xff] }
  0x63   :  { %v177_v34 = vmul.u32 48, %v176_v20  ;;  %v187_v42 = vshrl.u32 %v2649_v14, 5  ;;  %v2669_v43 = vadd.s32 48, %v2625_v1  ;;  %v2172_v44 = vpack.c.bf16 %v557_v40, %v556_v39  ;;  %v2685_v62 = vld [vmem:[#allocation5 + $0xc8] sm:$0xff]  ;;  %2143 = vmatpush3.bf16.msra.mxu0 %v2142_v37  ;;  %v560_v0 = vld [vmem:[#allocation5 + $0x130] sm:$0xff]  ;;  %v561_v2 = vld [vmem:[#allocation5 + $0x138] sm:$0xff] }
  0x64   :  { %v298_v49 = vmul.u32 48, %v297_v35  ;;  %v198_v50 = vshrl.u32 %v2657_v22, 5  ;;  %v209_v55 = vshrl.u32 %v2661_v29, 5  ;;  %v2679_v56 = vadd.s32 56, %v2625_v1  ;;  %v2690_v3 = vld [vmem:[#allocation5 + $0x40] sm:$0xff]  ;;  %2145 = vmatprep.subr.bf16.mxu0 %v2144_v38  ;;  %v2702_v11 = vld [vmem:[#allocation5 + $0x48] sm:$0xff] }
  0x65   :  { %v2672_v48 = vsub.s32 %v2625_v1, %v177_v34  ;;  %v188_v54 = vmul.u32 48, %v187_v42  ;;  %2173 = vmatprep.subr.bf16.mxu1 %v2172_v44  ;;  %v2146_v57 = vpack.c.bf16 %v527_v45, %v526_v41  ;;  %v2148_v58 = vpack.c.bf16 %v545_v47, %v544_v46  ;;  %v2704_v12 = vld [vmem:[#allocation5 + $0xd0] sm:$0xff]  ;;  %v2706_v13 = vld [vmem:[#allocation5 + $0xd8] sm:$0xff]  ;;  %v562_v20 = vld [vmem:[#allocation5 + $0x140] sm:$0xff] }
  0x66   :  { %v2176_v59 = vpack.c.bf16 %v559_v52, %v558_v51  ;;  %v2688_v63 = vadd.s32 64, %v2625_v1  ;;  %v2695_v8 = vsub.s32 %v2632_v4, %v298_v49  ;;  %v2150_v10 = vpack.c.bf16 %v2681_v60, %v2675_v53  ;;  %2175 = vmatpush3.bf16.msra.mxu1 %v2172_v44  ;;  %v563_v21 = vld [vmem:[#allocation5 + $0x148] sm:$0xff]  ;;  %v2715_v22 = vld [vmem:[#allocation5 + $0x50] sm:$0xff]  ;;  %v2719_v24 = vld [vmem:[#allocation5 + $0x58] sm:$0xff] }
  0x67   :  { %vm302_vm0 = vcmp.ne.s32.totalorder %v2672_v48, 0  ;;  %vm314_vm1 = vcmp.lt.s32.totalorder %v2672_v48, 0  ;;  %v2698_v9 = vsub.s32 %v2635_v5, %v188_v54  ;;  %v338_v14 = vadd.s32 48, %v2672_v48  ;;  %v2721_v25 = vld [vmem:[#allocation5 + $0xe0] sm:$0xff]  ;;  %v2723_v26 = vld [vmem:[#allocation5 + $0xe8] sm:$0xff]  ;;  %2147 = vmatpush3.bf16.msra.mxu0 %v2146_v57  ;;  %v564_v29 = vld [vmem:[#allocation5 + $0x150] sm:$0xff] }
  0x68   :  { %v199_v16 = vmul.u32 48, %v198_v50  ;;  %v210_v17 = vmul.u32 48, %v209_v55  ;;  %v2152_v4 = vpack.c.bf16 %v2685_v62, %v2683_v61  ;;  %v2180_v5 = vpack.c.bf16 %v561_v2, %v560_v0  ;;  %2177 = vmatprep.subr.bf16.mxu1 %v2176_v59  ;;  %v565_v30 = vld [vmem:[#allocation5 + $0x158] sm:$0xff]  ;;  %v2730_v31 = vld [vmem:[#allocation5 + $0x60] sm:$0xff]  ;;  %2149 = vmatprep.subr.bf16.mxu0 %v2148_v58  ;;  %v2737_v34 = vld [vmem:[#allocation5 + $0x68] sm:$0xff] }
  0x69   :  { %v2154_v18 = vpack.c.bf16 %v2702_v11, %v2690_v3  ;;  %v2156_v19 = vpack.c.bf16 %v2706_v13, %v2704_v12  ;;  %v2717_v23 = vpack.c.bf16 %v563_v21, %v562_v20  ;;  %vm313_vm2 = vcmp.ne.s32.totalorder %v2695_v8, 0  ;;  %v2739_v35 = vld [vmem:[#allocation5 + $0xf0] sm:$0xff]  ;;  %v2741_v37 = vld [vmem:[#allocation5 + $0xf8] sm:$0xff]  ;;  %v566_v44 = vld [vmem:[#allocation5 + $0x160] sm:$0xff] }
  0x6a   :  { %vm325_vm3 = vcmp.lt.s32.totalorder %v2695_v8, 0  ;;  %v349_v27 = vadd.s32 48, %v2695_v8  ;;  %v2158_v28 = vpack.c.bf16 %v2719_v24, %v2715_v22  ;;  %vm303_vm4 = vcmp.ne.s32.totalorder %v2698_v9, 0  ;;  %2179 = vmatpush3.bf16.msra.mxu1 %v2176_v59  ;;  %v567_v45 = vld [vmem:[#allocation5 + $0x168] sm:$0xff]  ;;  %v133_v47 = vld [vmem:[#allocation2] sm:$0xff]  ;;  %vm326_vm6 = vmand %vm314_vm1, %vm302_vm0 }
  0x6b   :  { %vm315_vm5 = vcmp.lt.s32.totalorder %v2698_v9, 0  ;;  %v200_v32 = vsub.s32 %v2638_v6, %v199_v16  ;;  %v2160_v33 = vpack.c.bf16 %v2723_v26, %v2721_v25  ;;  %v2744_v38 = vsub.s32 %v2641_v7, %v210_v17  ;;  %2181 = vmatprep.subr.bf16.mxu1 %v2180_v5  ;;  %2151 = vmatpush3.bf16.msra.mxu0 %v2150_v10  ;;  %v144_v52 = vld [vmem:[#allocation2 + $0x58] sm:$0xff]  ;;  %vm337_vm9 = vmand %vm325_vm3, %vm313_vm2  ;;  %v134_v57 = vld [vmem:[#allocation2 + $0x8] sm:$0xff] }
  0x6c   :  { %v2747_v39 = vmul.u32.u64.low 2863311531, %v2652_v15  ;;  %v2748_v40 = vmul.u32.u64.high 2863311531, %v2652_v15, %v2747_v39  ;;  %v2750_v41 = vpack.c.bf16 %v565_v30, %v564_v29  ;;  %v2162_v6 = vpack.c.bf16 %v2737_v34, %v2730_v31  ;;  %2153 = vmatprep.subr.bf16.mxu0 %v2152_v4  ;;  %vm327_vm12 = vmand %vm315_vm5, %vm303_vm4  ;;  %v135_v61 = vld [vmem:[#allocation2 + $0x10] sm:$0xff]  ;;  %v537_v13 = vld [vmem:[#allocation5 + $0x78] sm:$0xff] }
  0x6d   :  { %v2164_v42 = vpack.c.bf16 %v2741_v37, %v2739_v35  ;;  %v339_v46 = vadd.s32 48, %v2698_v9  ;;  %v2757_v7 = vpack.c.bf16 %v567_v45, %v566_v44  ;;  %vm304_vm7 = vcmp.ne.s32.totalorder %v200_v32, 0  ;;  %v536_v12 = vld [vmem:[#allocation5 + $0x70] sm:$0xff]  ;;  %v2835_v39 = vld [vmem:[#allocation2 + $0x20] sm:$0xff] }
  0x6e   :  { %vm316_vm8 = vcmp.lt.s32.totalorder %v200_v32, 0  ;;  %v340_v49 = vadd.s32 48, %v200_v32  ;;  %v350_v50 = vsel %vm326_vm6, %v338_v14, %v2672_v48  ;;  %v448_v51 = vmax.f32 %v133_v47, 0.0  ;;  %2183 = vmatpush3.bf16.msra.mxu1 %v2180_v5  ;;  %v136_v14 = vld [vmem:[#allocation2 + $0x18] sm:$0xff] }
  0x6f   :  { %vm305_vm10 = vcmp.ne.s32.totalorder %v2744_v38, 0  ;;  %vm317_vm11 = vcmp.lt.s32.totalorder %v2744_v38, 0  ;;  %v364_v53 = vadd.s32 4294967280, %v350_v50  ;;  %v361_v54 = vsel %vm337_vm9, %v349_v27, %v2695_v8  ;;  %vm328_vm15 = vmand %vm316_vm8, %vm304_vm7  ;;  %2185 = vmatprep.subr.bf16.mxu1 %v2717_v23  ;;  %2155 = vmatpush3.bf16.msra.mxu0 %v2154_v18  ;;  %v569_v27 = vld [vmem:[#allocation5 + $0x178] sm:$0xff] }
  0x70   :  { %v459_v55 = vmax.f32 %v144_v52, 0.0  ;;  %vm509_vm13 = vcmp.lt.s32.totalorder %v2625_v1, 6  ;;  %v341_v48 = vadd.s32 48, %v2744_v38  ;;  %v375_v58 = vadd.s32 4294967280, %v361_v54  ;;  %vm2787_vm2 = vmand %vm317_vm11, %vm305_vm10  ;;  %2157 = vmatprep.subr.bf16.mxu0 %v2156_v19  ;;  %v2908_v8 = vld [vmem:[#allocation2 + $0x38] sm:$0xff] }
  0x71   :  { %vm484_vm14 = vcmp.lt.s32.totalorder %v2625_v1, 2  ;;  %v351_v59 = vsel %vm327_vm12, %v339_v46, %v2698_v9  ;;  %v449_v60 = vmax.f32 %v134_v57, 0.0  ;;  %v220_v62 = vshrl.u32 %v2748_v40, 5 }
  0x72   :  { %vm376_vm0 = vcmp.ge.s32.totalorder %v364_v53, 0  ;;  %vm388_vm1 = vcmp.lt.s32.totalorder %v364_v53, 16  ;;  %v365_v0 = vadd.s32 4294967280, %v351_v59  ;;  %v352_v2 = vsel %vm328_vm15, %v340_v49, %v200_v32  ;;  %2187 = vmatpush3.bf16.msra.mxu1 %v2717_v23  ;;  %v568_v23 = vld [vmem:[#allocation5 + $0x170] sm:$0xff] }
  0x73   :  { %vm400_vm3 = vmand %vm376_vm0, %vm388_vm1  ;;  %vm387_vm4 = vcmp.ge.s32.totalorder %v375_v58, 0  ;;  %vm399_vm5 = vcmp.lt.s32.totalorder %v375_v58, 16  ;;  %v366_v9 = vadd.s32 4294967280, %v352_v2  ;;  %v450_v10 = vmax.f32 %v135_v61, 0.0  ;;  %2189 = vmatprep.subr.bf16.mxu1 %v2750_v41  ;;  %2159 = vmatpush3.bf16.msra.mxu0 %v2158_v28 }
  0x74   :  { %v2531_v16 = vmov 0.0   ;;  %vm411_vm6 = vmand %vm387_vm4, %vm399_vm5  ;;  %vm377_vm7 = vcmp.ge.s32.totalorder %v365_v0, 0  ;;  %vm389_vm8 = vcmp.lt.s32.totalorder %v365_v0, 16  ;;  %v353_v3 = vsel %vm2787_vm2, %v341_v48, %v2744_v38  ;;  %2161 = vmatprep.subr.bf16.mxu0 %v2160_v33 }
  0x75   :  { %v2798_v17 = vsel %vm400_vm3, 1.0, %v2531_v16  ;;  %v2808_v4 = vsel %vm411_vm6, 1.0, %v2531_v16  ;;  %vm401_vm9 = vmand %vm377_vm7, %vm389_vm8  ;;  %vm378_vm10 = vcmp.ge.s32.totalorder %v366_v9, 0  ;;  %vm390_vm11 = vcmp.lt.s32.totalorder %v366_v9, 16 }
  0x76   :  { %v2805_v11 = vmul.f32 %v2798_v17, %v448_v51  ;;  %v2812_v5 = vmul.f32 %v2808_v4, %v459_v55  ;;  %v2815_v18 = vsel %vm401_vm9, 1.0, %v2531_v16  ;;  %vm402_vm12 = vmand %vm378_vm10, %vm390_vm11  ;;  %v367_v19 = vadd.s32 4294967280, %v353_v3  ;;  %2191 = vmatpush3.bf16.msra.mxu1 %v2750_v41 }
  0x77   :  { %v451_v20 = vmax.f32 %v136_v14, 0.0  ;;  %v461_v29 = vmul.f32 %v2815_v18, %v449_v60  ;;  %v2825_v32 = vsel %vm402_vm12, 1.0, %v2531_v16  ;;  %v2166_v28 = vpack.c.bf16 %v537_v13, %v536_v12  ;;  %2193 = vmatprep.subr.bf16.mxu1 %v2757_v7  ;;  %2163 = vmatpush3.bf16.msra.mxu0 %v2162_v6  ;;  %v2865_v6 = vld [vmem:[#allocation2 + $0x28] sm:$0xff]  ;;  %v2896_v60 = vld [vmem:[#allocation2 + $0x30] sm:$0xff] }
  0x78   :  { %641 = vmatprep.mubr.f32.mxu0 %v2805_v11  ;;  %v472_v21 = vrot.slane %v2805_v11, 6  ;;  %v497_v30 = vrot.slane %v2805_v11, 2  ;;  %v483_v22 = vrot.slane %v2812_v5, 6  ;;  %v2832_v24 = vmul.f32 %v2825_v32, %v450_v10  ;;  %2165 = vmatprep.subr.bf16.mxu0 %v2164_v42  ;;  %v851_v11 = vld [vmem:[#allocation7 + $0x60] sm:$0xff] }
  0x79   :  { %vm379_vm15 = vcmp.ge.s32.totalorder %v367_v19, 0  ;;  %vm391_vm0 = vcmp.lt.s32.totalorder %v367_v19, 16  ;;  %v498_v38 = vrot.slane %v461_v29, 2  ;;  %v221_v40 = vmul.u32 48, %v220_v62 }
  0x7a   :  { %vm403_vm1 = vmand %vm379_vm15, %vm391_vm0  ;;  %v2838_v44 = vadd.s32 72, %v2625_v1  ;;  %v2196_v25 = vpack.c.bf16 %v569_v27, %v568_v23  ;;  %v473_v26 = vrot.slane %v461_v29, 6  ;;  %v499_v33 = vrot.slane %v2832_v24, 2  ;;  %2195 = vmatpush3.bf16.msra.mxu1 %v2757_v7 }
  0x7b   :  { %v2843_v45 = vsel %vm403_vm1, 1.0, %v2531_v16  ;;  %v520_v41 = vsel %vm509_vm13, %v497_v30, %v498_v38  ;;  %v474_v46 = vrot.slane %v2832_v24, 6  ;;  %v222_v49 = vsub.s32 %v2652_v15, %v221_v40  ;;  %2167 = vmatpush3.bf16.msra.mxu0 %v2166_v28 }
  0x7c   :  { %v2854_v47 = vmul.f32 %v2843_v45, %v451_v20  ;;  %v496_v31 = vsel %vm484_vm14, %v483_v22, %v472_v21  ;;  %1968 = vmatprep.mubr.f32.mxu1 %v520_v41  ;;  %v452_v34 = vmax.f32 %v2835_v39, 0.0  ;;  %2197 = vmatprep.subr.bf16.mxu1 %v2196_v25  ;;  %v495_v37 = vsel %vm484_vm14, %v472_v21, %v473_v26 }
  0x7d   :  { %v2868_v50 = vmul.u32.u64.low 2863311531, %v2665_v36  ;;  %v2869_v51 = vmul.u32.u64.high 2863311531, %v2665_v36, %v2868_v50  ;;  %vm306_vm2 = vcmp.ne.s32.totalorder %v222_v49, 0  ;;  %vm318_vm3 = vcmp.lt.s32.totalorder %v222_v49, 0 }
  0x7e   :  { %v500_v15 = vrot.slane %v2854_v47, 2  ;;  %v475_v35 = vrot.slane %v2854_v47, 6  ;;  %vm2876_vm4 = vmand %vm318_vm3, %vm306_vm2  ;;  %v342_v52 = vadd.s32 48, %v222_v49  ;;  %v519_v7 = vsel %vm509_vm13, %v498_v38, %v499_v33  ;;  %2199 = vmatpush3.bf16.msra.mxu1 %v2196_v25  ;;  %642 = vmatmul.mubr.f32.vlgmr.msra.gmra.mrb[0].mxu0 %v496_v31 }
  0x7f   :  { %v2881_v53 = vmul.u32.u64.low 2863311531, %v2669_v43  ;;  %v2882_v54 = vmul.u32.u64.high 2863311531, %v2669_v43, %v2881_v53  ;;  %v494_v55 = vsel %vm484_vm14, %v473_v26, %v474_v46  ;;  %v453_v48 = vmax.f32 %v2865_v6, 0.0  ;;  %646 = vmatprep.mubr.f32.mxu0 %v461_v29  ;;  %v2929_v29 = vld [vmem:[#allocation2 + $0x40] sm:$0xff] }
  0x80   :  { %v518_v57 = vsel %vm509_vm13, %v499_v33, %v500_v15  ;;  %v354_v58 = vsel %vm2876_vm4, %v342_v52, %v222_v49  ;;  %v231_v59 = vshrl.u32 %v2869_v51, 5  ;;  %v2906_v0 = vsel %vm484_vm14, %v474_v46, %v475_v35 }
  0x81   :  { %v2899_v61 = vmul.u32.u64.low 2863311531, %v2679_v56  ;;  %v2900_v62 = vmul.u32.u64.high 2863311531, %v2679_v56, %v2899_v61  ;;  %v368_v2 = vadd.s32 4294967280, %v354_v58  ;;  %v242_v3 = vshrl.u32 %v2882_v54, 5  ;;  %1969 = vmatmul.mubr.f32.vlgmr.msra.gmra.mrb[0].mxu1 %v519_v7 }
  0x82   :  { %v2911_v9 = vmul.u32.u64.low 2863311531, %v2688_v63  ;;  %v2912_v10 = vmul.u32.u64.high 2863311531, %v2688_v63, %v2911_v9  ;;  %v232_v14 = vmul.u32 48, %v231_v59  ;;  %v454_v19 = vmax.f32 %v2896_v60, 0.0  ;;  %1971 = vmatprep.mubr.f32.mxu1 %v518_v57  ;;  %647 = vmatmul.mubr.f32.gmra.mrb[2].mxu0 %v495_v37 }
  0x83   :  { %v2916_v12 = vmul.u32.u64.low 2863311531, %v2838_v44  ;;  %v2917_v13 = vmul.u32.u64.high 2863311531, %v2838_v44, %v2916_v12  ;;  %vm380_vm5 = vcmp.ge.s32.totalorder %v368_v2, 0  ;;  %vm392_vm6 = vcmp.lt.s32.totalorder %v368_v2, 16  ;;  %651 = vmatprep.mubr.f32.mxu0 %v2832_v24 }
  0x84   :  { %v2921_v20 = vadd.s32 80, %v2625_v1  ;;  %vm404_vm7 = vmand %vm380_vm5, %vm392_vm6  ;;  %v233_v21 = vsub.s32 %v2665_v36, %v232_v14  ;;  %v243_v23 = vmul.u32 48, %v242_v3  ;;  %v253_v27 = vshrl.u32 %v2900_v62, 5 }
  0x85   :  { %v455_v28 = vmax.f32 %v2908_v8, 0.0  ;;  %v2927_v38 = vsel %vm404_vm7, 1.0, %v2531_v16  ;;  %v264_v40 = vshrl.u32 %v2912_v10, 5  ;;  %v275_v31 = vshrl.u32 %v2917_v13, 5 }
  0x86   :  { %v2933_v25 = vmul.u32.u64.low 2863311531, %v2921_v20  ;;  %v2934_v26 = vmul.u32.u64.high 2863311531, %v2921_v20, %v2933_v25  ;;  %v2937_v36 = vmul.f32 %v2927_v38, %v452_v34  ;;  %vm307_vm8 = vcmp.ne.s32.totalorder %v233_v21, 0  ;;  %652 = vmatmul.mubr.f32.gmra.mrb[4].mxu0 %v494_v55 }
  0x87   :  { %vm319_vm9 = vcmp.lt.s32.totalorder %v233_v21, 0  ;;  %v343_v33 = vadd.s32 48, %v233_v21  ;;  %v244_v41 = vsub.s32 %v2669_v43, %v243_v23  ;;  %v254_v46 = vmul.u32 48, %v253_v27  ;;  %656 = vmatprep.mubr.f32.mxu0 %v2854_v47  ;;  %v839_v25 = vld [vmem:[#allocation7] sm:$0xff] }
  0x88   :  { %vm331_vm10 = vmand %vm319_vm9, %vm307_vm8  ;;  %v265_v49 = vmul.u32 48, %v264_v40  ;;  %v501_v50 = vrot.slane %v2937_v36, 2  ;;  %v476_v51 = vrot.slane %v2937_v36, 6  ;;  %v456_v34 = vmax.f32 %v2929_v29, 0.0 }
  0x89   :  { %v355_v37 = vsel %vm331_vm10, %v343_v33, %v233_v21  ;;  %vm308_vm11 = vcmp.ne.s32.totalorder %v244_v41, 0  ;;  %vm320_vm12 = vcmp.lt.s32.totalorder %v244_v41, 0  ;;  %v344_v52 = vadd.s32 48, %v244_v41 }
  0x8a   :  { %v369_v42 = vadd.s32 4294967280, %v355_v37  ;;  %v517_v43 = vsel %vm509_vm13, %v500_v15, %v501_v50  ;;  %v492_v24 = vsel %vm484_vm14, %v475_v35, %v476_v51  ;;  %vm332_vm15 = vmand %vm320_vm12, %vm308_vm11  ;;  %v255_v53 = vsub.s32 %v2679_v56, %v254_v46  ;;  %657 = vmatmul.mubr.f32.gmra.mrb[6].mxu0 %v2906_v0 }
  0x8b   :  { %v266_v54 = vsub.s32 %v2688_v63, %v265_v49  ;;  %1972 = vmatmul.mubr.f32.gmra.mrb[2].mxu1 %v517_v43  ;;  %v356_v7 = vsel %vm332_vm15, %v344_v52, %v244_v41  ;;  %v276_v55 = vmul.u32 48, %v275_v31  ;;  %661 = vmatprep.mubr.f32.mxu0 %v2937_v36  ;;  %v286_v62 = vshrl.u32 %v2934_v26, 5  ;;  %v840_v26 = vld [vmem:[#allocation7 + $0x8] sm:$0xff]  ;;  %v842_v52 = vld [vmem:[#allocation7 + $0x18] sm:$0xff] }
  0x8c   :  { %vm381_vm0 = vcmp.ge.s32.totalorder %v369_v42, 0  ;;  %vm393_vm1 = vcmp.lt.s32.totalorder %v369_v42, 16  ;;  %v370_v57 = vadd.s32 4294967280, %v356_v7  ;;  %vm309_vm3 = vcmp.ne.s32.totalorder %v255_v53, 0  ;;  %v841_v42 = vld [vmem:[#allocation7 + $0x10] sm:$0xff]  ;;  %v844_v7 = vld [vmem:[#allocation7 + $0x28] sm:$0xff] }
  0x8d   :  { %vm405_vm2 = vmand %vm381_vm0, %vm393_vm1  ;;  %vm321_vm4 = vcmp.lt.s32.totalorder %v255_v53, 0  ;;  %v345_v15 = vadd.s32 48, %v255_v53  ;;  %vm310_vm6 = vcmp.ne.s32.totalorder %v266_v54, 0  ;;  %vm322_vm7 = vcmp.lt.s32.totalorder %v266_v54, 0 }
  0x8e   :  { %v2957_v58 = vsel %vm405_vm2, 1.0, %v2531_v16  ;;  %vm333_vm5 = vmand %vm321_vm4, %vm309_vm3  ;;  %v346_v56 = vadd.s32 48, %v266_v54  ;;  %vm382_vm8 = vcmp.ge.s32.totalorder %v370_v57, 0  ;;  %vm394_vm9 = vcmp.lt.s32.totalorder %v370_v57, 16  ;;  %662 = vmatmul.mubr.f32.gmra.mrb[8].mxu0 %v492_v24 }
  0x8f   :  { %v465_v63 = vmul.f32 %v2957_v58, %v453_v48  ;;  %v357_v47 = vsel %vm333_vm5, %v345_v15, %v255_v53  ;;  %vm334_vm10 = vmand %vm322_vm7, %vm310_vm6  ;;  %v277_v61 = vsub.s32 %v2838_v44, %v276_v55  ;;  %v287_v40 = vmul.u32 48, %v286_v62 }
  0x90   :  { %vm406_vm11 = vmand %vm382_vm8, %vm394_vm9  ;;  %v371_v35 = vadd.s32 4294967280, %v357_v47  ;;  %v358_v59 = vsel %vm334_vm10, %v346_v56, %v266_v54  ;;  %v843_v54 = vld [vmem:[#allocation7 + $0x20] sm:$0xff]  ;;  %v2204_v57 = vpack.c.bf16 %v842_v52, %v841_v42  ;;  %v3020_v47 = vld [vmem:[#allocation2 + $0x50] sm:$0xff] }
  0x91   :  { %v502_v2 = vrot.slane %v465_v63, 2  ;;  %v477_v9 = vrot.slane %v465_v63, 6  ;;  %v2967_v0 = vsel %vm406_vm11, 1.0, %v2531_v16  ;;  %v372_v10 = vadd.s32 4294967280, %v358_v59  ;;  %666 = vmatprep.mubr.f32.mxu0 %v465_v63  ;;  %v853_v52 = vld [vmem:[#allocation7 + $0x70] sm:$0xff] }
  0x92   :  { %v466_v48 = vmul.f32 %v2967_v0, %v454_v19  ;;  %vm383_vm12 = vcmp.ge.s32.totalorder %v371_v35, 0  ;;  %vm395_vm15 = vcmp.lt.s32.totalorder %v371_v35, 16  ;;  %vm311_vm0 = vcmp.ne.s32.totalorder %v277_v61, 0 }
  0x93   :  { %v516_v14 = vsel %vm509_vm13, %v501_v50, %v502_v2  ;;  %v491_v44 = vsel %vm484_vm14, %v476_v51, %v477_v9  ;;  %vm407_vm1 = vmand %vm383_vm12, %vm395_vm15  ;;  %vm384_vm2 = vcmp.ge.s32.totalorder %v372_v10, 0  ;;  %vm396_vm3 = vcmp.lt.s32.totalorder %v372_v10, 16 }
  0x94   :  { %1974 = vmatprep.mubr.f32.mxu1 %v516_v14  ;;  %v503_v3 = vrot.slane %v466_v48, 2  ;;  %v478_v12 = vrot.slane %v466_v48, 6  ;;  %v2977_v13 = vsel %vm407_vm1, 1.0, %v2531_v16  ;;  %vm408_vm4 = vmand %vm384_vm2, %vm396_vm3  ;;  %vm323_vm5 = vcmp.lt.s32.totalorder %v277_v61, 0  ;;  %667 = vmatmul.mubr.f32.gmra.mrb[10].mxu0 %v491_v44 }
  0x95   :  { %v467_v19 = vmul.f32 %v2977_v13, %v455_v28  ;;  %v2983_v21 = vsel %vm408_vm4, 1.0, %v2531_v16  ;;  %vm2986_vm6 = vmand %vm323_vm5, %vm311_vm0  ;;  %v347_v27 = vadd.s32 48, %v277_v61  ;;  %v2997_v28 = vld [vmem:[#allocation2 + $0x48] sm:$0xff]  ;;  %v288_v31 = vsub.s32 %v2921_v20, %v287_v40  ;;  %671 = vmatprep.mubr.f32.mxu0 %v466_v48 }
  0x96   :  { %v515_v36 = vsel %vm509_vm13, %v502_v2, %v503_v3  ;;  %v2995_v33 = vmul.f32 %v2983_v21, %v456_v34  ;;  %v490_v41 = vsel %vm484_vm14, %v477_v9, %v478_v12  ;;  %v2200_v34 = vpack.c.bf16 %v840_v26, %v839_v25  ;;  %v845_v2 = vld [vmem:[#allocation7 + $0x30] sm:$0xff]  ;;  %v846_v9 = vld [vmem:[#allocation7 + $0x38] sm:$0xff]  ;;  %v847_v40 = vld [vmem:[#allocation7 + $0x40] sm:$0xff] }
  0x97   :  { %1975 = vmatmul.mubr.f32.gmra.mrb[4].mxu1 %v515_v36  ;;  %v504_v46 = vrot.slane %v467_v19, 2  ;;  %v359_v49 = vsel %vm2986_vm6, %v347_v27, %v277_v61  ;;  %v479_v50 = vrot.slane %v467_v19, 6  ;;  %v457_v24 = vmax.f32 %v2997_v28, 0.0  ;;  %v848_v25 = vld [vmem:[#allocation7 + $0x48] sm:$0xff] }
  0x98   :  { %v505_v51 = vrot.slane %v2995_v33, 2  ;;  %v373_v37 = vadd.s32 4294967280, %v359_v49  ;;  %vm312_vm7 = vcmp.ne.s32.totalorder %v288_v31, 0  ;;  %vm324_vm8 = vcmp.lt.s32.totalorder %v288_v31, 0  ;;  %2201 = vmatprep.subr.bf16.mxu1 %v2200_v34  ;;  %672 = vmatmul.mubr.f32.gmra.mrb[12].mxu0 %v490_v41 }
  0x99   :  { %v514_v43 = vsel %vm509_vm13, %v503_v3, %v504_v46  ;;  %vm3010_vm11 = vmand %vm324_vm8, %vm312_vm7  ;;  %v348_v55 = vadd.s32 48, %v288_v31  ;;  %676 = vmatprep.mubr.f32.mxu0 %v467_v19  ;;  %v489_v15 = vsel %vm484_vm14, %v478_v12, %v479_v50  ;;  %v480_v56 = vrot.slane %v2995_v33, 6  ;;  %2203 = vmatpush3.bf16.msra.mxu1 %v2200_v34 }
  0x9a   :  { %1977 = vmatprep.mubr.f32.mxu1 %v514_v43  ;;  %v513_v53 = vsel %vm509_vm13, %v504_v46, %v505_v51  ;;  %vm385_vm9 = vcmp.ge.s32.totalorder %v373_v37, 0  ;;  %vm397_vm10 = vcmp.lt.s32.totalorder %v373_v37, 16  ;;  %2205 = vmatprep.subr.bf16.mxu1 %v2204_v57  ;;  %v2208_v61 = vpack.c.bf16 %v844_v7, %v843_v54  ;;  %v850_v37 = vld [vmem:[#allocation7 + $0x58] sm:$0xff] }
  0x9b   :  { %1978 = vmatmul.mubr.f32.gmra.mrb[6].mxu1 %v513_v53  ;;  %vm409_vm12 = vmand %vm385_vm9, %vm397_vm10  ;;  %v360_v59 = vsel %vm3010_vm11, %v348_v55, %v288_v31  ;;  %v458_v48 = vmax.f32 %v3020_v47, 0.0  ;;  %v488_v14 = vsel %vm484_vm14, %v479_v50, %v480_v56  ;;  %v2212_v12 = vpack.c.bf16 %v846_v9, %v845_v2  ;;  %v854_v43 = vld [vmem:[#allocation7 + $0x78] sm:$0xff] }
  0x9c   :  { %v3018_v63 = vsel %vm409_vm12, 1.0, %v2531_v16  ;;  %v374_v62 = vadd.s32 4294967280, %v360_v59  ;;  %677 = vmatmul.mubr.f32.gmra.mrb[14].mxu0 %v489_v15  ;;  %v508_v27 = vrot.slane %v2812_v5, 2  ;;  %v2216_v41 = vpack.c.bf16 %v848_v25, %v847_v40  ;;  %v3053_v7 = vld [vmem:[#allocation6] ss:$0 sm:$0xff] }
  0x9d   :  { %v469_v35 = vmul.f32 %v3018_v63, %v457_v24  ;;  %681 = vmatprep.mubr.f32.mxu0 %v2995_v33  ;;  %2207 = vmatpush3.bf16.msra.mxu1 %v2204_v57  ;;  %v2228_v24 = vpack.c.bf16 %v854_v43, %v853_v52 }
  0x9e   :  { %vm386_vm15 = vcmp.ge.s32.totalorder %v374_v62, 0  ;;  %vm398_vm0 = vcmp.lt.s32.totalorder %v374_v62, 16  ;;  %2209 = vmatprep.subr.bf16.mxu1 %v2208_v61  ;;  %v521_v31 = vsel %vm509_vm13, %v508_v27, %v497_v30  ;;  %v852_v30 = vld [vmem:[#allocation7 + $0x68] sm:$0xff] }
  0x9f   :  { %v506_v10 = vrot.slane %v469_v35, 2  ;;  %v481_v44 = vrot.slane %v469_v35, 6  ;;  %vm410_vm1 = vmand %vm386_vm15, %vm398_vm0  ;;  %v2224_v42 = vpack.c.bf16 %v852_v30, %v851_v11 }
  0xa0   :  { %v3032_v19 = vsel %vm410_vm1, 1.0, %v2531_v16  ;;  %682 = vmatmul.mubr.f32.gmra.mrb[16].mxu0 %v488_v14 }
  0xa1   :  { %v512_v3 = vsel %vm509_vm13, %v505_v51, %v506_v10  ;;  %v470_v23 = vmul.f32 %v3032_v19, %v458_v48  ;;  %686 = vmatprep.mubr.f32.mxu0 %v469_v35  ;;  %v487_v26 = vsel %vm484_vm14, %v480_v56, %v481_v44  ;;  %2211 = vmatpush3.bf16.msra.mxu1 %v2208_v61  ;;  %v849_v51 = vld [vmem:[#allocation7 + $0x50] sm:$0xff] }
  0xa2   :  { %1980 = vmatprep.mubr.f32.mxu1 %v512_v3  ;;  %2213 = vmatprep.subr.bf16.mxu1 %v2212_v12  ;;  %v2220_v34 = vpack.c.bf16 %v850_v37, %v849_v51  ;;  %v1133_v3 = vld [vmem:[#allocation5 + $0x298] sm:$0xff] }
  0xa3   :  { %v507_v36 = vrot.slane %v470_v23, 2  ;;  %v482_v33 = vrot.slane %v470_v23, 6 }
  0xa4   :  { %687 = vmatmul.mubr.f32.gmra.mrb[18].mxu0 %v487_v26 }
  0xa5   :  { %v511_v16 = vsel %vm509_vm13, %v506_v10, %v507_v36  ;;  %v510_v46 = vsel %vm509_vm13, %v507_v36, %v508_v27  ;;  %691 = vmatprep.mubr.f32.mxu0 %v470_v23  ;;  %v486_v49 = vsel %vm484_vm14, %v481_v44, %v482_v33  ;;  %2215 = vmatpush3.bf16.msra.mxu1 %v2212_v12  ;;  %v1132_v44 = vld [vmem:[#allocation5 + $0x290] sm:$0xff]  ;;  %vm1084_vm13 = vcmp.lt.s32.totalorder %v2625_v1, 7 }
  0xa6   :  { %1981 = vmatmul.mubr.f32.gmra.mrb[8].mxu1 %v511_v16  ;;  %2217 = vmatprep.subr.bf16.mxu1 %v2216_v41  ;;  %v485_v50 = vsel %vm484_vm14, %v482_v33, %v483_v22  ;;  %v1131_v22 = vld [vmem:[#allocation5 + $0x288] sm:$0xff]  ;;  %v2268_v36 = vpack.c.bf16 %v1133_v3, %v1132_v44  ;;  %vm1059_vm14 = vcmp.lt.s32.totalorder %v2625_v1, 1  ;;  %v1423_v1 = vld [vmem:[#allocation7 + $0xb0] sm:$0xff] }
  0xa7   :  { %1983 = vmatprep.mubr.f32.mxu1 %v510_v46  ;;  %v1135_v16 = vld [vmem:[#allocation5 + $0x2a8] sm:$0xff] }
  0xa8   :  { %692 = vmatmul.mubr.f32.gmra.mrb[20].mxu0 %v486_v49 }
  0xa9   :  { %696 = vmatprep.mubr.f32.mxu0 %v2812_v5  ;;  %2219 = vmatpush3.bf16.msra.mxu1 %v2216_v41  ;;  %v1130_v5 = vld [vmem:[#allocation5 + $0x280] sm:$0xff] }
  0xaa   :  { %1984 = vmatmul.mubr.f32.gmra.mrb[10].mxu1 %v521_v31  ;;  %2221 = vmatprep.subr.bf16.mxu1 %v2220_v34  ;;  %v2264_v53 = vpack.c.bf16 %v1131_v22, %v1130_v5  ;;  %v1134_v41 = vld [vmem:[#allocation5 + $0x2a0] sm:$0xff] }
  0xab   :  { %v2272_v37 = vpack.c.bf16 %v1135_v16, %v1134_v41 }
  0xac   :  { %697 = vmatmul.mubr.f32.gmra.mrb[22].mxu0 %v485_v50 }
  0xad   :  { %2223 = vmatpush3.bf16.msra.mxu1 %v2220_v34 }
  0xae   :  { %2225 = vmatprep.subr.bf16.mxu1 %v2224_v42 }
  0xb1   :  { %2227 = vmatpush3.bf16.msra.mxu1 %v2224_v42 }
  0xb2   :  { %2229 = vmatprep.subr.bf16.mxu1 %v2228_v24 }
  0xb5   :  { %2231 = vmatpush3.bf16.msra.mxu1 %v2228_v24 }
  0xb6   :  { %2265 = vmatprep.subr.bf16.mxu1 %v2264_v53 }
 0x151   :  { %v1720_v20 = vpop.f32.mrb[0].mxu0 }
 0x152   :  { %v1721_v54 = vpop.f32.mrb[1].mxu0 }
 0x153   :  { %v1722_v55 = vadd.f32 %v1721_v54, %v1720_v20 }
 0x154   :  { %v1970_v57 = vpop.f32.mrb[0].mxu1 }
 0x155   :  { %v768_v15 = vpop.f32.mrb[1].mxu1  ;;  %v1723_v56 = vpop.f32.mrb[2].mxu0  ;;  %v644_v35 = vadd.f32 %v1722_v55, %v3053_v7 }
 0x156   :  { %v1724_v59 = vpop.f32.mrb[3].mxu0 }
 0x157   :  { %v1725_v61 = vadd.f32 %v1724_v59, %v1723_v56  ;;  %v769_v62 = vadd.f32 %v768_v15, %v644_v35 }
 0x159   :  { %v649_v2 = vadd.f32 %v1725_v61, %v3053_v7  ;;  %v827_v9 = vmax.f32 %v769_v62, 0.0  ;;  %v1726_v10 = vpop.f32.mrb[4].mxu0 }
 0x15a   :  { %v1727_v48 = vpop.f32.mrb[5].mxu0 }
 0x15b   :  { %v774_v12 = vadd.f32 %v1970_v57, %v649_v2  ;;  %v1728_v23 = vadd.f32 %v1727_v48, %v1726_v10  ;;  %2018 = vmatprep.mubr.f32.mxu1 %v827_v9 }
 0x15d   :  { %v828_v40 = vmax.f32 %v774_v12, 0.0  ;;  %v1729_v25 = vpop.f32.mrb[6].mxu0  ;;  %v654_v26 = vadd.f32 %v1728_v23, %v3053_v7 }
 0x15e   :  { %v1973_v14 = vpop.f32.mrb[2].mxu1  ;;  %v1730_v33 = vpop.f32.mrb[7].mxu0 }
 0x15f   :  { %v778_v27 = vpop.f32.mrb[3].mxu1  ;;  %v1731_v46 = vadd.f32 %v1730_v33, %v1729_v25  ;;  %2019 = vmatmul.mubr.f32.vlgmr.msra.gmra.mrb[12].mxu1 %v828_v40 }
 0x160   :  { %v779_v49 = vadd.f32 %v778_v27, %v654_v26  ;;  %2267 = vmatpush3.bf16.msra.mxu1 %v2264_v53 }
 0x161   :  { %v659_v31 = vadd.f32 %v1731_v46, %v3053_v7  ;;  %v1732_v51 = vpop.f32.mrb[8].mxu0  ;;  %2269 = vmatprep.subr.bf16.mxu1 %v2268_v36 }
 0x162   :  { %v829_v50 = vmax.f32 %v779_v49, 0.0  ;;  %v1733_v34 = vpop.f32.mrb[9].mxu0 }
 0x163   :  { %v1734_v11 = vadd.f32 %v1733_v34, %v1732_v51  ;;  %v784_v30 = vadd.f32 %v1973_v14, %v659_v31 }
 0x164   :  { %2021 = vmatprep.mubr.f32.mxu1 %v829_v50  ;;  %2271 = vmatpush3.bf16.msra.mxu1 %v2268_v36 }
 0x165   :  { %v664_v43 = vadd.f32 %v1734_v11, %v3053_v7  ;;  %v830_v24 = vmax.f32 %v784_v30, 0.0  ;;  %2273 = vmatprep.subr.bf16.mxu1 %v2272_v37 }
 0x167   :  { %v1735_v42 = vpop.f32.mrb[10].mxu0  ;;  %2022 = vmatmul.mubr.f32.gmra.mrb[14].mxu1 %v830_v24 }
 0x168   :  { %v1736_v5 = vpop.f32.mrb[11].mxu0  ;;  %2275 = vmatpush3.bf16.msra.mxu1 %v2272_v37 }
 0x169   :  { %v1737_v53 = vadd.f32 %v1736_v5, %v1735_v42 }
 0x16a   :  { %v1976_v52 = vpop.f32.mrb[4].mxu1 }
 0x16b   :  { %v788_v22 = vpop.f32.mrb[5].mxu1  ;;  %v669_v54 = vadd.f32 %v1737_v53, %v3053_v7  ;;  %v1738_v57 = vpop.f32.mrb[12].mxu0 }
 0x16c   :  { %v789_v20 = vadd.f32 %v788_v22, %v664_v43  ;;  %v1739_v56 = vpop.f32.mrb[13].mxu0 }
 0x16d   :  { %v1740_v59 = vadd.f32 %v1739_v56, %v1738_v57  ;;  %v794_v61 = vadd.f32 %v1976_v52, %v669_v54  ;;  %v1137_v56 = vld [vmem:[#allocation5 + $0x2b8] sm:$0xff] }
 0x16e   :  { %v831_v55 = vmax.f32 %v789_v20, 0.0  ;;  %v1979_v15 = vpop.f32.mrb[6].mxu1 }
 0x16f   :  { %v798_v35 = vpop.f32.mrb[7].mxu1  ;;  %v1741_v62 = vpop.f32.mrb[14].mxu0  ;;  %v674_v2 = vadd.f32 %v1740_v59, %v3053_v7  ;;  %v832_v9 = vmax.f32 %v794_v61, 0.0  ;;  %v1138_v59 = vld [vmem:[#allocation5 + $0x2c0] sm:$0xff]  ;;  %v1139_v61 = vld [vmem:[#allocation5 + $0x2c8] sm:$0xff] }
 0x170   :  { %2024 = vmatprep.mubr.f32.mxu1 %v831_v55  ;;  %v1742_v10 = vpop.f32.mrb[15].mxu0 }
 0x171   :  { %v1743_v48 = vadd.f32 %v1742_v10, %v1741_v62  ;;  %v799_v14 = vadd.f32 %v798_v35, %v674_v2  ;;  %2025 = vmatmul.mubr.f32.gmra.mrb[16].mxu1 %v832_v9  ;;  %v2280_v62 = vpack.c.bf16 %v1139_v61, %v1138_v59  ;;  %v1114_v2 = vld [vmem:[#allocation5 + $0x200] sm:$0xff]  ;;  %v1115_v9 = vld [vmem:[#allocation5 + $0x208] sm:$0xff]  ;;  %v1108_v61 = vld [vmem:[#allocation5 + $0x1d0] sm:$0xff] }
 0x172   :  { %v1098_v10 = vld [vmem:[#allocation5 + $0x180] sm:$0xff] }
 0x173   :  { %v679_v44 = vadd.f32 %v1743_v48, %v3053_v7  ;;  %v833_v3 = vmax.f32 %v799_v14, 0.0  ;;  %v1744_v12 = vpop.f32.mrb[16].mxu0  ;;  %v2232_v48 = vpack.c.bf16 %v1115_v9, %v1114_v2  ;;  %v1140_v14 = vld [vmem:[#allocation5 + $0x2d0] sm:$0xff]  ;;  %v1126_v9 = vld [vmem:[#allocation5 + $0x260] sm:$0xff] }
 0x174   :  { %v1745_v23 = vpop.f32.mrb[17].mxu0 }
 0x175   :  { %v1746_v27 = vadd.f32 %v1745_v23, %v1744_v12  ;;  %2027 = vmatprep.mubr.f32.mxu1 %v833_v3  ;;  %v804_v40 = vadd.f32 %v1979_v15, %v679_v44  ;;  %v1136_v15 = vld [vmem:[#allocation5 + $0x2b0] sm:$0xff]  ;;  %v1141_v44 = vld [vmem:[#allocation5 + $0x2d8] sm:$0xff]  ;;  %2233 = vmatprep.subr.bf16.mxu0 %v2232_v48  ;;  %v1142_v23 = vld [vmem:[#allocation5 + $0x2e0] sm:$0xff] }
 0x176   :  { %v2276_v35 = vpack.c.bf16 %v1137_v56, %v1136_v15  ;;  %v2284_v12 = vpack.c.bf16 %v1141_v44, %v1140_v14  ;;  %v1124_v56 = vld [vmem:[#allocation5 + $0x250] sm:$0xff]  ;;  %v1111_v14 = vld [vmem:[#allocation5 + $0x1e8] sm:$0xff] }
 0x177   :  { %v1747_v25 = vpop.f32.mrb[18].mxu0  ;;  %v684_v26 = vadd.f32 %v1746_v27, %v3053_v7  ;;  %v834_v36 = vmax.f32 %v804_v40, 0.0  ;;  %v1143_v27 = vld [vmem:[#allocation5 + $0x2e8] sm:$0xff] }
 0x178   :  { %v1748_v41 = vpop.f32.mrb[19].mxu0  ;;  %2277 = vmatprep.subr.bf16.mxu1 %v2276_v35  ;;  %v2288_v40 = vpack.c.bf16 %v1143_v27, %v1142_v23  ;;  %v1112_v27 = vld [vmem:[#allocation5 + $0x1f0] sm:$0xff] }
 0x179   :  { %v1982_v33 = vpop.f32.mrb[8].mxu1  ;;  %v1749_v16 = vadd.f32 %v1748_v41, %v1747_v25  ;;  %2028 = vmatmul.mubr.f32.gmra.mrb[18].mxu1 %v834_v36  ;;  %v1144_v25 = vld [vmem:[#allocation5 + $0x2f0] sm:$0xff] }
 0x17a   :  { %v808_v46 = vpop.f32.mrb[9].mxu1  ;;  %2279 = vmatpush3.bf16.msra.mxu1 %v2276_v35  ;;  %v1116_v36 = vld [vmem:[#allocation5 + $0x210] sm:$0xff]  ;;  %v1125_v35 = vld [vmem:[#allocation5 + $0x258] sm:$0xff] }
 0x17b   :  { %v809_v49 = vadd.f32 %v808_v46, %v684_v26  ;;  %v689_v31 = vadd.f32 %v1749_v16, %v3053_v7  ;;  %v1750_v50 = vpop.f32.mrb[20].mxu0  ;;  %2281 = vmatprep.subr.bf16.mxu1 %v2280_v62  ;;  %v1145_v26 = vld [vmem:[#allocation5 + $0x2f8] sm:$0xff]  ;;  %v1100_v41 = vld [vmem:[#allocation5 + $0x190] sm:$0xff]  ;;  %v2252_v59 = vpack.c.bf16 %v1125_v35, %v1124_v56 }
 0x17c   :  { %v1751_v37 = vpop.f32.mrb[21].mxu0  ;;  %v2292_v16 = vpack.c.bf16 %v1145_v26, %v1144_v25  ;;  %v3067_v26 = vld [vmem:[#allocation8] ss:$0 sm:$0xff] }
 0x17d   :  { %v835_v51 = vmax.f32 %v809_v49, 0.0  ;;  %v1985_v34 = vpop.f32.mrb[10].mxu1  ;;  %v1752_v11 = vadd.f32 %v1751_v37, %v1750_v50  ;;  %v814_v42 = vadd.f32 %v1982_v33, %v689_v31  ;;  %v1117_v33 = vld [vmem:[#allocation5 + $0x218] sm:$0xff]  ;;  %v1118_v31 = vld [vmem:[#allocation5 + $0x220] sm:$0xff]  ;;  %v1119_v50 = vld [vmem:[#allocation5 + $0x228] sm:$0xff] }
 0x17e   :  { %v818_v30 = vpop.f32.mrb[11].mxu1  ;;  %2283 = vmatpush3.bf16.msra.mxu1 %v2280_v62  ;;  %v2236_v46 = vpack.c.bf16 %v1117_v33, %v1116_v36  ;;  %v1101_v49 = vld [vmem:[#allocation5 + $0x198] sm:$0xff]  ;;  %v2240_v37 = vpack.c.bf16 %v1119_v50, %v1118_v31  ;;  %v2378_v31 = vld [vmem:[#allocation2] sm:$0xff] }
 0x17f   :  { %2030 = vmatprep.mubr.f32.mxu1 %v835_v51  ;;  %v1753_v52 = vpop.f32.mrb[22].mxu0  ;;  %v694_v43 = vadd.f32 %v1752_v11, %v3053_v7  ;;  %v836_v24 = vmax.f32 %v814_v42, 0.0  ;;  %2285 = vmatprep.subr.bf16.mxu1 %v2284_v12  ;;  %v2238_v51 = vpack.c.bf16 %v1101_v49, %v1100_v41  ;;  %v1103_v11 = vld [vmem:[#allocation5 + $0x1a8] sm:$0xff]  ;;  %v1120_v42 = vld [vmem:[#allocation5 + $0x230] sm:$0xff]  ;;  %v1109_v62 = vld [vmem:[#allocation5 + $0x1d8] sm:$0xff] }
 0x180   :  { %v1754_v5 = vpop.f32.mrb[23].mxu0  ;;  %v2254_v2 = vpack.c.bf16 %v1109_v62, %v1108_v61 }
 0x181   :  { %v1755_v22 = vadd.f32 %v1754_v5, %v1753_v52  ;;  %v819_v53 = vadd.f32 %v818_v30, %v694_v43  ;;  %2031 = vmatmul.mubr.f32.gmra.mrb[20].mxu1 %v836_v24  ;;  %v1121_v52 = vld [vmem:[#allocation5 + $0x238] sm:$0xff]  ;;  %v1104_v43 = vld [vmem:[#allocation5 + $0x1b0] sm:$0xff] }
 0x182   :  { %2287 = vmatpush3.bf16.msra.mxu1 %v2284_v12  ;;  %v2244_v24 = vpack.c.bf16 %v1121_v52, %v1120_v42  ;;  %v1105_v5 = vld [vmem:[#allocation5 + $0x1b8] sm:$0xff] }
 0x183   :  { %v699_v20 = vadd.f32 %v1755_v22, %v3053_v7  ;;  %v837_v54 = vmax.f32 %v819_v53, 0.0  ;;  %v1099_v7 = vld [vmem:[#allocation5 + $0x188] sm:$0xff]  ;;  %2289 = vmatprep.subr.bf16.mxu1 %v2288_v40  ;;  %v2246_v22 = vpack.c.bf16 %v1105_v5, %v1104_v43  ;;  %v1122_v53 = vld [vmem:[#allocation5 + $0x240] sm:$0xff]  ;;  %v1129_v12 = vld [vmem:[#allocation5 + $0x278] sm:$0xff] }
 0x184   :  { %v2234_v3 = vpack.c.bf16 %v1099_v7, %v1098_v10  ;;  %v1127_v10 = vld [vmem:[#allocation5 + $0x268] sm:$0xff]  ;;  %v1110_v7 = vld [vmem:[#allocation5 + $0x1e0] sm:$0xff] }
 0x185   :  { %2033 = vmatprep.mubr.f32.mxu1 %v837_v54  ;;  %v824_v55 = vadd.f32 %v1985_v34, %v699_v20  ;;  %v1102_v34 = vld [vmem:[#allocation5 + $0x1a0] sm:$0xff]  ;;  %v1123_v20 = vld [vmem:[#allocation5 + $0x248] sm:$0xff]  ;;  %v2256_v48 = vpack.c.bf16 %v1127_v10, %v1126_v9  ;;  %v2258_v44 = vpack.c.bf16 %v1111_v14, %v1110_v7 }
 0x186   :  { %2235 = vmatpush3.bf16.msra.mxu0 %v2234_v3  ;;  %2291 = vmatpush3.bf16.msra.mxu1 %v2288_v40  ;;  %v2242_v30 = vpack.c.bf16 %v1103_v11, %v1102_v34  ;;  %v1106_v54 = vld [vmem:[#allocation5 + $0x1c0] sm:$0xff]  ;;  %v1128_v3 = vld [vmem:[#allocation5 + $0x270] sm:$0xff]  ;;  %v1113_v40 = vld [vmem:[#allocation5 + $0x1f8] sm:$0xff] }
 0x187   :  { %v838_v57 = vmax.f32 %v824_v55, 0.0  ;;  %2293 = vmatprep.subr.bf16.mxu1 %v2292_v16  ;;  %2237 = vmatprep.subr.bf16.mxu0 %v2236_v46  ;;  %v2248_v55 = vpack.c.bf16 %v1123_v20, %v1122_v53  ;;  %v2260_v23 = vpack.c.bf16 %v1129_v12, %v1128_v3  ;;  %v2262_v25 = vpack.c.bf16 %v1113_v40, %v1112_v27  ;;  %v2377_v46 = vld [vmem:[#allocation2 + $0x8] sm:$0xff]  ;;  %v2380_v20 = vld [vmem:[#allocation2 + $0x10] sm:$0xff] }
 0x189   :  { %2034 = vmatmul.mubr.f32.gmra.mrb[22].mxu1 %v838_v57  ;;  %v1107_v57 = vld [vmem:[#allocation5 + $0x1c8] sm:$0xff] }
 0x18a   :  { %2239 = vmatpush3.bf16.msra.mxu0 %v2238_v51  ;;  %2295 = vmatpush3.bf16.msra.mxu1 %v2292_v16  ;;  %v2250_v15 = vpack.c.bf16 %v1107_v57, %v1106_v54 }
 0x18b   :  { %2241 = vmatprep.subr.bf16.mxu0 %v2240_v37 }
 0x18e   :  { %2243 = vmatpush3.bf16.msra.mxu0 %v2242_v30 }
 0x18f   :  { %2245 = vmatprep.subr.bf16.mxu0 %v2244_v24 }
 0x192   :  { %2247 = vmatpush3.bf16.msra.mxu0 %v2246_v22  ;;  %v2379_v22 = vld [vmem:[#allocation2 + $0x18] sm:$0xff] }
 0x193   :  { %2249 = vmatprep.subr.bf16.mxu0 %v2248_v55 }
 0x196   :  { %2251 = vmatpush3.bf16.msra.mxu0 %v2250_v15 }
 0x197   :  { %2253 = vmatprep.subr.bf16.mxu0 %v2252_v59 }
 0x19a   :  { %2255 = vmatpush3.bf16.msra.mxu0 %v2254_v2 }
 0x19b   :  { %2257 = vmatprep.subr.bf16.mxu0 %v2256_v48 }
 0x19e   :  { %2259 = vmatpush3.bf16.msra.mxu0 %v2258_v44 }
 0x19f   :  { %2261 = vmatprep.subr.bf16.mxu0 %v2260_v23 }
 0x1a2   :  { %2263 = vmatpush3.bf16.msra.mxu0 %v2262_v25 }
 0x232   :  { %v2020_v36 = vpop.f32.mrb[12].mxu1 }
 0x233   :  { %v934_v33 = vadd.f32 %v2020_v36, %v3067_v26  ;;  %v928_v41 = vpop.f32.mrb[13].mxu1 }
 0x234   :  { %v929_v16 = vadd.f32 %v3067_v26, %v928_v41 }
 0x235   :  { %v988_v49 = vadd.f32 %v2377_v46, %v934_v33 }
 0x236   :  { %v987_v50 = vadd.f32 %v2378_v31, %v929_v16 }
 0x237   :  { %v1024_v51 = vmax.f32 %v988_v49, 0.0 }
 0x238   :  { %v1023_v37 = vmax.f32 %v987_v50, 0.0 }
 0x239   :  { %v3072_v34 = vmul.f32 %v2815_v18, %v1024_v51 }
 0x23a   :  { %v2023_v11 = vpop.f32.mrb[14].mxu1  ;;  %v3075_v30 = vmul.f32 %v2798_v17, %v1023_v37 }
 0x23b   :  { %v944_v42 = vadd.f32 %v2023_v11, %v3067_v26  ;;  %v938_v52 = vpop.f32.mrb[15].mxu1  ;;  %v1073_v43 = vrot.slane %v3072_v34, 1  ;;  %v1048_v24 = vrot.slane %v3072_v34, 7 }
 0x23c   :  { %v939_v5 = vadd.f32 %v3067_v26, %v938_v52  ;;  %v1047_v18 = vrot.slane %v3075_v30, 7  ;;  %1218 = vmatprep.mubr.f32.mxu0 %v3075_v30  ;;  %v1072_v17 = vrot.slane %v3075_v30, 1 }
 0x23d   :  { %v3086_v53 = vadd.f32 %v2379_v22, %v944_v42 }
 0x23e   :  { %v3088_v54 = vadd.f32 %v2380_v20, %v939_v5  ;;  %v1095_v55 = vsel %vm1084_vm13, %v1072_v17, %v1073_v43  ;;  %v3100_v57 = vsel %vm1059_vm14, %v1047_v18, %v1048_v24 }
 0x23f   :  { %v1026_v15 = vmax.f32 %v3086_v53, 0.0  ;;  %2068 = vmatprep.mubr.f32.mxu1 %v1095_v55 }
 0x240   :  { %v1025_v56 = vmax.f32 %v3088_v54, 0.0 }
 0x241   :  { %v3105_v35 = vmul.f32 %v2843_v45, %v1026_v15 }
 0x242   :  { %v3108_v59 = vmul.f32 %v2825_v32, %v1025_v56 }
 0x243   :  { %v1075_v9 = vrot.slane %v3105_v35, 1 }
 0x244   :  { %v2026_v61 = vpop.f32.mrb[16].mxu1  ;;  %v1074_v48 = vrot.slane %v3108_v59, 1 }
 0x245   :  { %v954_v62 = vadd.f32 %v2026_v61, %v3067_v26  ;;  %v948_v2 = vpop.f32.mrb[17].mxu1 }
 0x246   :  { %v949_v10 = vadd.f32 %v3067_v26, %v948_v2  ;;  %v1094_v45 = vsel %vm1084_vm13, %v1073_v43, %v1074_v48  ;;  %v1093_v32 = vsel %vm1084_vm13, %v1074_v48, %v1075_v9 }
 0x247   :  { %v992_v7 = vadd.f32 %v954_v62, %v2865_v6  ;;  %2069 = vmatmul.mubr.f32.vlgmr.msra.gmra.mrb[24].mxu1 %v1094_v45  ;;  %v2381_v45 = vld [vmem:[#allocation2 + $0x58] sm:$0xff] }
 0x248   :  { %v991_v14 = vadd.f32 %v949_v10, %v2835_v39  ;;  %2071 = vmatprep.mubr.f32.mxu1 %v1093_v32 }
 0x249   :  { %v1028_v44 = vmax.f32 %v992_v7, 0.0 }
 0x24a   :  { %v1027_v3 = vmax.f32 %v991_v14, 0.0 }
 0x24b   :  { %v3121_v12 = vmul.f32 %v2957_v58, %v1028_v44 }
 0x24c   :  { %v3124_v23 = vmul.f32 %v2927_v38, %v1027_v3  ;;  %v2029_v27 = vpop.f32.mrb[18].mxu1 }
 0x24d   :  { %v964_v6 = vadd.f32 %v2029_v27, %v3067_v26  ;;  %v958_v39 = vpop.f32.mrb[19].mxu1  ;;  %v1077_v40 = vrot.slane %v3121_v12, 1  ;;  %v1052_v25 = vrot.slane %v3121_v12, 7 }
 0x24e   :  { %v959_v36 = vadd.f32 %v3067_v26, %v958_v39  ;;  %v1076_v33 = vrot.slane %v3124_v23, 1  ;;  %v1051_v41 = vrot.slane %v3124_v23, 7 }
 0x24f   :  { %v994_v58 = vadd.f32 %v964_v6, %v2908_v8 }
 0x250   :  { %v993_v16 = vadd.f32 %v959_v36, %v2896_v60  ;;  %v1092_v38 = vsel %vm1084_vm13, %v1075_v9, %v1076_v33  ;;  %v1091_v46 = vsel %vm1084_vm13, %v1076_v33, %v1077_v40  ;;  %v3142_v31 = vsel %vm1059_vm14, %v1051_v41, %v1052_v25 }
 0x251   :  { %v1030_v49 = vmax.f32 %v994_v58, 0.0  ;;  %2072 = vmatmul.mubr.f32.gmra.mrb[26].mxu1 %v1092_v38 }
 0x252   :  { %v1029_v50 = vmax.f32 %v993_v16, 0.0  ;;  %2074 = vmatprep.mubr.f32.mxu1 %v1091_v46  ;;  %v1419_v46 = vld [vmem:[#allocation7 + $0x90] sm:$0xff] }
 0x253   :  { %v3145_v8 = vmul.f32 %v2977_v13, %v1030_v49  ;;  %v1420_v49 = vld [vmem:[#allocation7 + $0x98] sm:$0xff] }
 0x254   :  { %v3148_v60 = vmul.f32 %v2967_v0, %v1029_v50  ;;  %v2032_v51 = vpop.f32.mrb[20].mxu1  ;;  %v1421_v50 = vld [vmem:[#allocation7 + $0xa0] sm:$0xff] }
 0x255   :  { %v974_v37 = vadd.f32 %v2032_v51, %v3067_v26  ;;  %v968_v11 = vpop.f32.mrb[21].mxu1  ;;  %v1079_v42 = vrot.slane %v3145_v8, 1  ;;  %v1054_v52 = vrot.slane %v3145_v8, 7  ;;  %v1424_v51 = vld [vmem:[#allocation7 + $0xb8] sm:$0xff] }
 0x256   :  { %v969_v43 = vadd.f32 %v3067_v26, %v968_v11  ;;  %v1078_v5 = vrot.slane %v3148_v60, 1  ;;  %v1053_v22 = vrot.slane %v3148_v60, 7  ;;  %v1425_v11 = vld [vmem:[#allocation7 + $0xc0] sm:$0xff] }
 0x257   :  { %v3157_v13 = vadd.f32 %v974_v37, %v2997_v28  ;;  %v2308_v37 = vpack.c.bf16 %v1424_v51, %v1423_v1 }
 0x258   :  { %v3160_v0 = vadd.f32 %v969_v43, %v2929_v29  ;;  %v1090_v20 = vsel %vm1084_vm13, %v1077_v40, %v1078_v5  ;;  %v1089_v55 = vsel %vm1084_vm13, %v1078_v5, %v1079_v42  ;;  %v1065_v15 = vsel %vm1059_vm14, %v1052_v25, %v1053_v22  ;;  %v1427_v43 = vld [vmem:[#allocation7 + $0xd0] sm:$0xff]  ;;  %v1428_v5 = vld [vmem:[#allocation7 + $0xd8] sm:$0xff] }
 0x259   :  { %v1032_v56 = vmax.f32 %v3157_v13, 0.0  ;;  %2075 = vmatmul.mubr.f32.gmra.mrb[28].mxu1 %v1090_v20  ;;  %v1064_v28 = vsel %vm1059_vm14, %v1053_v22, %v1054_v52  ;;  %v2316_v22 = vpack.c.bf16 %v1428_v5, %v1427_v43  ;;  %v1429_v20 = vld [vmem:[#allocation7 + $0xe0] sm:$0xff] }
 0x25a   :  { %v1031_v29 = vmax.f32 %v3160_v0, 0.0  ;;  %2077 = vmatprep.mubr.f32.mxu1 %v1089_v55  ;;  %v1430_v55 = vld [vmem:[#allocation7 + $0xe8] sm:$0xff] }
 0x25b   :  { %v1044_v61 = vmul.f32 %v3018_v63, %v1032_v56  ;;  %v1431_v56 = vld [vmem:[#allocation7 + $0xf0] sm:$0xff] }
 0x25c   :  { %v1043_v62 = vmul.f32 %v2983_v21, %v1031_v29  ;;  %v2035_v2 = vpop.f32.mrb[22].mxu1 }
 0x25d   :  { %v984_v9 = vadd.f32 %v2035_v2, %v3067_v26  ;;  %v978_v10 = vpop.f32.mrb[23].mxu1  ;;  %v1081_v48 = vrot.slane %v1044_v61, 1 }
 0x25e   :  { %v979_v7 = vadd.f32 %v3067_v26, %v978_v10  ;;  %v1080_v14 = vrot.slane %v1043_v62, 1 }
 0x25f   :  { %v998_v32 = vadd.f32 %v2381_v45, %v984_v9 }
 0x260   :  { %v997_v44 = vadd.f32 %v979_v7, %v3020_v47  ;;  %v1088_v3 = vsel %vm1084_vm13, %v1079_v42, %v1080_v14  ;;  %v1087_v63 = vsel %vm1084_vm13, %v1080_v14, %v1081_v48  ;;  %v1426_v42 = vld [vmem:[#allocation7 + $0xc8] sm:$0xff] }
 0x261   :  { %v1034_v27 = vmax.f32 %v998_v32, 0.0  ;;  %2078 = vmatmul.mubr.f32.gmra.mrb[30].mxu1 %v1088_v3  ;;  %v3228_v32 = vld [vmem:[#allocation6 + $0x1] ss:$0 sm:$0xff] }
 0x262   :  { %v1033_v21 = vmax.f32 %v997_v44, 0.0  ;;  %2080 = vmatprep.mubr.f32.mxu1 %v1087_v63 }
 0x263   :  { %v1046_v6 = vmul.f32 %v2808_v4, %v1034_v27 }
 0x264   :  { %v1045_v39 = vmul.f32 %v3032_v19, %v1033_v21 }
 0x265   :  { %v1058_v26 = vrot.slane %v1046_v6, 7  ;;  %v1083_v40 = vrot.slane %v1046_v6, 1 }
 0x266   :  { %v1082_v25 = vrot.slane %v1045_v39, 1  ;;  %v1057_v36 = vrot.slane %v1045_v39, 7 }
 0x267   :  { %v1071_v47 = vsel %vm1059_vm14, %v1058_v26, %v1047_v18  ;;  %v1096_v33 = vsel %vm1084_vm13, %v1083_v40, %v1072_v17  ;;  %v1049_v18 = vrot.slane %v3108_v59, 7  ;;  %v1050_v17 = vrot.slane %v3105_v35, 7 }
 0x268   :  { %1219 = vmatmul.mubr.f32.vlgmr.msra.gmra.mrb[24].mxu0 %v1071_v47  ;;  %v1086_v4 = vsel %vm1084_vm13, %v1081_v48, %v1082_v25  ;;  %v1085_v19 = vsel %vm1084_vm13, %v1082_v25, %v1083_v40  ;;  %v1060_v58 = vsel %vm1059_vm14, %v1057_v36, %v1058_v26 }
 0x269   :  { %1223 = vmatprep.mubr.f32.mxu0 %v3072_v34  ;;  %2081 = vmatmul.mubr.f32.gmra.mrb[32].mxu1 %v1086_v4  ;;  %v1069_v30 = vsel %vm1059_vm14, %v1048_v24, %v1049_v18  ;;  %v1068_v16 = vsel %vm1059_vm14, %v1049_v18, %v1050_v17  ;;  %v1055_v34 = vrot.slane %v1043_v62, 7 }
 0x26a   :  { %2083 = vmatprep.mubr.f32.mxu1 %v1085_v19 }
 0x26b   :  { %v1063_v24 = vsel %vm1059_vm14, %v1054_v52, %v1055_v34  ;;  %v2312_v52 = vpack.c.bf16 %v1426_v42, %v1425_v11 }
 0x26c   :  { %1224 = vmatmul.mubr.f32.gmra.mrb[26].mxu0 %v3100_v57  ;;  %v1067_v57 = vsel %vm1059_vm14, %v1050_v17, %v1051_v41  ;;  %v1418_v41 = vld [vmem:[#allocation7 + $0x88] sm:$0xff] }
 0x26d   :  { %1228 = vmatprep.mubr.f32.mxu0 %v3108_v59  ;;  %2084 = vmatmul.mubr.f32.gmra.mrb[34].mxu1 %v1096_v33 }
 0x270   :  { %1229 = vmatmul.mubr.f32.gmra.mrb[28].mxu0 %v1069_v30 }
 0x271   :  { %1233 = vmatprep.mubr.f32.mxu0 %v3105_v35  ;;  %v1056_v35 = vrot.slane %v1044_v61, 7 }
 0x273   :  { %v1062_v59 = vsel %vm1059_vm14, %v1055_v34, %v1056_v35 }
 0x274   :  { %1234 = vmatmul.mubr.f32.gmra.mrb[30].mxu0 %v1068_v16 }
 0x275   :  { %1238 = vmatprep.mubr.f32.mxu0 %v3124_v23  ;;  %v1417_v23 = vld [vmem:[#allocation7 + $0x80] sm:$0xff] }
 0x276   :  { %v2296_v38 = vpack.c.bf16 %v1418_v41, %v1417_v23 }
 0x278   :  { %1239 = vmatmul.mubr.f32.gmra.mrb[32].mxu0 %v1067_v57  ;;  %2297 = vmatprep.subr.bf16.mxu0 %v2296_v38 }
 0x279   :  { %1243 = vmatprep.mubr.f32.mxu0 %v3121_v12  ;;  %v1061_v12 = vsel %vm1059_vm14, %v1056_v35, %v1057_v36  ;;  %2328 = vmatprep.subr.bf16.mxu1 %v2296_v38 }
 0x27a   :  { %2299 = vmatpush3.bf16.msra.mxu0 %v2296_v38  ;;  %2336 = vmatpush3.bf16.msra.mxu1 %v2296_v38 }
 0x27c   :  { %1244 = vmatmul.mubr.f32.gmra.mrb[34].mxu0 %v3142_v31  ;;  %v2300_v31 = vpack.c.bf16 %v1420_v49, %v1419_v46 }
 0x27d   :  { %1248 = vmatprep.mubr.f32.mxu0 %v3148_v60 }
 0x27e   :  { %2301 = vmatprep.subr.bf16.mxu0 %v2300_v31  ;;  %2329 = vmatprep.subr.bf16.mxu1 %v2300_v31 }
 0x27f   :  { %2303 = vmatpush3.bf16.msra.mxu0 %v2300_v31  ;;  %2337 = vmatpush3.bf16.msra.mxu1 %v2300_v31 }
 0x280   :  { %1249 = vmatmul.mubr.f32.gmra.mrb[36].mxu0 %v1065_v15  ;;  %v2320_v15 = vpack.c.bf16 %v1430_v55, %v1429_v20 }
 0x281   :  { %1253 = vmatprep.mubr.f32.mxu0 %v3145_v8  ;;  %v1422_v8 = vld [vmem:[#allocation7 + $0xa8] sm:$0xff] }
 0x282   :  { %v2304_v60 = vpack.c.bf16 %v1422_v8, %v1421_v50 }
 0x284   :  { %1254 = vmatmul.mubr.f32.gmra.mrb[38].mxu0 %v1064_v28  ;;  %2305 = vmatprep.subr.bf16.mxu0 %v2304_v60  ;;  %v1432_v28 = vld [vmem:[#allocation7 + $0xf8] sm:$0xff] }
 0x285   :  { %1258 = vmatprep.mubr.f32.mxu0 %v1043_v62  ;;  %2330 = vmatprep.subr.bf16.mxu1 %v2304_v60  ;;  %v2324_v29 = vpack.c.bf16 %v1432_v28, %v1431_v56 }
 0x286   :  { %2307 = vmatpush3.bf16.msra.mxu0 %v2304_v60  ;;  %2338 = vmatpush3.bf16.msra.mxu1 %v2304_v60 }
 0x287   :  { %2309 = vmatprep.subr.bf16.mxu0 %v2308_v37  ;;  %2331 = vmatprep.subr.bf16.mxu1 %v2308_v37 }
 0x288   :  { %1259 = vmatmul.mubr.f32.gmra.mrb[40].mxu0 %v1063_v24 }
 0x289   :  { %1263 = vmatprep.mubr.f32.mxu0 %v1044_v61 }
 0x28a   :  { %2311 = vmatpush3.bf16.msra.mxu0 %v2308_v37  ;;  %2339 = vmatpush3.bf16.msra.mxu1 %v2308_v37 }
 0x28b   :  { %2313 = vmatprep.subr.bf16.mxu0 %v2312_v52  ;;  %2332 = vmatprep.subr.bf16.mxu1 %v2312_v52 }
 0x28c   :  { %1264 = vmatmul.mubr.f32.gmra.mrb[42].mxu0 %v1062_v59 }
 0x28d   :  { %1268 = vmatprep.mubr.f32.mxu0 %v1045_v39 }
 0x28e   :  { %2315 = vmatpush3.bf16.msra.mxu0 %v2312_v52  ;;  %2340 = vmatpush3.bf16.msra.mxu1 %v2312_v52 }
 0x28f   :  { %2317 = vmatprep.subr.bf16.mxu0 %v2316_v22  ;;  %2333 = vmatprep.subr.bf16.mxu1 %v2316_v22 }
 0x290   :  { %1269 = vmatmul.mubr.f32.gmra.mrb[44].mxu0 %v1061_v12 }
 0x291   :  { %1273 = vmatprep.mubr.f32.mxu0 %v1046_v6 }
 0x292   :  { %2319 = vmatpush3.bf16.msra.mxu0 %v2316_v22  ;;  %2341 = vmatpush3.bf16.msra.mxu1 %v2316_v22 }
 0x293   :  { %2321 = vmatprep.subr.bf16.mxu0 %v2320_v15  ;;  %2334 = vmatprep.subr.bf16.mxu1 %v2320_v15 }
 0x294   :  { %1274 = vmatmul.mubr.f32.gmra.mrb[46].mxu0 %v1060_v58 }
 0x296   :  { %2323 = vmatpush3.bf16.msra.mxu0 %v2320_v15  ;;  %2342 = vmatpush3.bf16.msra.mxu1 %v2320_v15 }
 0x297   :  { %2325 = vmatprep.subr.bf16.mxu0 %v2324_v29  ;;  %2335 = vmatprep.subr.bf16.mxu1 %v2324_v29 }
 0x29a   :  { %2327 = vmatpush3.bf16.msra.mxu0 %v2324_v29  ;;  %2343 = vmatpush3.bf16.msra.mxu1 %v2324_v29 }
 0x31a   :  { %v2070_v61 = vpop.f32.mrb[24].mxu1 }
 0x31b   :  { %v1345_v62 = vpop.f32.mrb[25].mxu1 }
 0x324   :  { %v2073_v2 = vpop.f32.mrb[26].mxu1 }
 0x325   :  { %v1355_v9 = vpop.f32.mrb[27].mxu1 }
 0x32c   :  { %v2076_v10 = vpop.f32.mrb[28].mxu1 }
 0x32d   :  { %v1365_v48 = vpop.f32.mrb[29].mxu1 }
 0x334   :  { %v2079_v7 = vpop.f32.mrb[30].mxu1 }
 0x335   :  { %v1375_v14 = vpop.f32.mrb[31].mxu1 }
 0x33b   :  { %v1844_v45 = vpop.f32.mrb[24].mxu0 }
 0x33c   :  { %v1845_v44 = vpop.f32.mrb[25].mxu0  ;;  %v3230_v3 = vpop.f32.mrb[32].mxu1 }
 0x33d   :  { %v1846_v63 = vadd.f32 %v1845_v44, %v1844_v45  ;;  %v3232_v27 = vpop.f32.mrb[33].mxu1 }
 0x33f   :  { %v1221_v21 = vadd.f32 %v1846_v63, %v3228_v32  ;;  %v1847_v6 = vpop.f32.mrb[26].mxu0 }
 0x340   :  { %v1848_v39 = vpop.f32.mrb[27].mxu0  ;;  %v3235_v26 = vpop.f32.mrb[34].mxu1 }
 0x341   :  { %v1849_v40 = vadd.f32 %v1848_v39, %v1847_v6  ;;  %v3237_v25 = vpop.f32.mrb[35].mxu1  ;;  %v1346_v36 = vadd.f32 %v1345_v62, %v1221_v21 }
 0x343   :  { %v1226_v47 = vadd.f32 %v1849_v40, %v3228_v32  ;;  %v1850_v33 = vpop.f32.mrb[28].mxu0  ;;  %v1404_v4 = vmax.f32 %v1346_v36, 0.0 }
 0x344   :  { %v1851_v19 = vpop.f32.mrb[29].mxu0 }
 0x345   :  { %v1351_v58 = vadd.f32 %v2070_v61, %v1226_v47  ;;  %v1852_v18 = vadd.f32 %v1851_v19, %v1850_v33  ;;  %2118 = vmatprep.mubr.f32.mxu0 %v1404_v4 }
 0x347   :  { %v1405_v30 = vmax.f32 %v1351_v58, 0.0  ;;  %v1231_v17 = vadd.f32 %v1852_v18, %v3228_v32  ;;  %v1853_v16 = vpop.f32.mrb[30].mxu0 }
 0x348   :  { %v1854_v57 = vpop.f32.mrb[31].mxu0 }
 0x349   :  { %v1855_v34 = vadd.f32 %v1854_v57, %v1853_v16  ;;  %2119 = vmatmul.mubr.f32.vlgmr.msra.gmra.mrb[48].mxu0 %v1405_v30  ;;  %v1356_v24 = vadd.f32 %v1355_v9, %v1231_v17 }
 0x34b   :  { %v1236_v35 = vadd.f32 %v1855_v34, %v3228_v32  ;;  %v1856_v59 = vpop.f32.mrb[32].mxu0  ;;  %v1406_v12 = vmax.f32 %v1356_v24, 0.0 }
 0x34c   :  { %v1857_v23 = vpop.f32.mrb[33].mxu0 }
 0x34d   :  { %v1858_v41 = vadd.f32 %v1857_v23, %v1856_v59  ;;  %2121 = vmatprep.mubr.f32.mxu0 %v1406_v12  ;;  %v1361_v38 = vadd.f32 %v2073_v2, %v1236_v35 }
 0x34f   :  { %v1241_v46 = vadd.f32 %v1858_v41, %v3228_v32  ;;  %v1859_v49 = vpop.f32.mrb[34].mxu0  ;;  %v1407_v31 = vmax.f32 %v1361_v38, 0.0 }
 0x350   :  { %v1860_v50 = vpop.f32.mrb[35].mxu0 }
 0x351   :  { %v1861_v8 = vadd.f32 %v1860_v50, %v1859_v49  ;;  %2122 = vmatmul.mubr.f32.gmra.mrb[50].mxu0 %v1407_v31  ;;  %v1366_v60 = vadd.f32 %v1365_v48, %v1241_v46 }
 0x353   :  { %v1246_v1 = vadd.f32 %v1861_v8, %v3228_v32  ;;  %v1862_v51 = vpop.f32.mrb[36].mxu0  ;;  %v1408_v37 = vmax.f32 %v1366_v60, 0.0 }
 0x354   :  { %v1863_v11 = vpop.f32.mrb[37].mxu0 }
 0x355   :  { %v1864_v42 = vadd.f32 %v1863_v11, %v1862_v51  ;;  %2124 = vmatprep.mubr.f32.mxu0 %v1408_v37  ;;  %v1371_v52 = vadd.f32 %v2076_v10, %v1246_v1 }
 0x357   :  { %v1251_v43 = vadd.f32 %v1864_v42, %v3228_v32  ;;  %v1865_v5 = vpop.f32.mrb[38].mxu0  ;;  %v1409_v22 = vmax.f32 %v1371_v52, 0.0 }
 0x358   :  { %v1866_v20 = vpop.f32.mrb[39].mxu0 }
 0x359   :  { %v1867_v55 = vadd.f32 %v1866_v20, %v1865_v5  ;;  %2125 = vmatmul.mubr.f32.gmra.mrb[52].mxu0 %v1409_v22  ;;  %v1376_v15 = vadd.f32 %v1375_v14, %v1251_v43 }
 0x35b   :  { %v1256_v56 = vadd.f32 %v1867_v55, %v3228_v32  ;;  %v1868_v28 = vpop.f32.mrb[40].mxu0  ;;  %v1410_v29 = vmax.f32 %v1376_v15, 0.0 }
 0x35c   :  { %v1869_v61 = vpop.f32.mrb[41].mxu0 }
 0x35d   :  { %v1381_v62 = vadd.f32 %v2079_v7, %v1256_v56  ;;  %v1870_v2 = vadd.f32 %v1869_v61, %v1868_v28  ;;  %2127 = vmatprep.mubr.f32.mxu1 %v1410_v29 }
 0x35f   :  { %v1411_v9 = vmax.f32 %v1381_v62, 0.0  ;;  %v1261_v48 = vadd.f32 %v1870_v2, %v3228_v32  ;;  %v1871_v10 = vpop.f32.mrb[42].mxu0 }
 0x360   :  { %v1872_v45 = vpop.f32.mrb[43].mxu0 }
 0x361   :  { %v1873_v44 = vadd.f32 %v1872_v45, %v1871_v10  ;;  %2128 = vmatmul.mubr.f32.vlgmr.msra.gmra.mrb[36].mxu1 %v1411_v9  ;;  %v1386_v63 = vadd.f32 %v3232_v27, %v1261_v48 }
 0x363   :  { %v1266_v21 = vadd.f32 %v1873_v44, %v3228_v32  ;;  %v1874_v14 = vpop.f32.mrb[44].mxu0  ;;  %v1412_v6 = vmax.f32 %v1386_v63, 0.0 }
 0x364   :  { %v1875_v39 = vpop.f32.mrb[45].mxu0 }
 0x365   :  { %v1876_v40 = vadd.f32 %v1875_v39, %v1874_v14  ;;  %2130 = vmatprep.mubr.f32.mxu1 %v1412_v6  ;;  %v1391_v7 = vadd.f32 %v3230_v3, %v1266_v21  ;;  %v1681_v3 = vld [vmem:[#allocation8 + $0x1] ss:$0 sm:$0xff] }
 0x367   :  { %v1271_v36 = vadd.f32 %v1876_v40, %v3228_v32  ;;  %v1877_v47 = vpop.f32.mrb[46].mxu0  ;;  %v1413_v33 = vmax.f32 %v1391_v7, 0.0 }
 0x368   :  { %v1878_v4 = vpop.f32.mrb[47].mxu0 }
 0x369   :  { %v1879_v19 = vadd.f32 %v1878_v4, %v1877_v47  ;;  %2131 = vmatmul.mubr.f32.gmra.mrb[38].mxu1 %v1413_v33  ;;  %v1396_v58 = vadd.f32 %v3237_v25, %v1271_v36 }
 0x36b   :  { %v1276_v27 = vadd.f32 %v1879_v19, %v3228_v32  ;;  %v1414_v18 = vmax.f32 %v1396_v58, 0.0 }
 0x36d   :  { %2133 = vmatprep.mubr.f32.mxu1 %v1414_v18  ;;  %v1401_v30 = vadd.f32 %v3235_v26, %v1276_v27 }
 0x36f   :  { %v1415_v17 = vmax.f32 %v1401_v30, 0.0 }
 0x371   :  { %2134 = vmatmul.mubr.f32.gmra.mrb[40].mxu1 %v1415_v17 }
 0x41c   :  { %v2120_v16 = vpop.f32.mrb[48].mxu0 }
 0x41d   :  { %v1507_v57 = vpop.f32.mrb[49].mxu0 }
 0x424   :  { %v2123_v34 = vpop.f32.mrb[50].mxu0 }
 0x425   :  { %v1523_v24 = vadd.f32 %v2123_v34, %v1681_v3  ;;  %v1517_v35 = vpop.f32.mrb[51].mxu0 }
 0x426   :  { %v1518_v59 = vadd.f32 %v1681_v3, %v1517_v35 }
 0x427   :  { %v1569_v12 = vadd.f32 %v1523_v24, %v3086_v53 }
 0x428   :  { %v1568_v23 = vadd.f32 %v1518_v59, %v3088_v54 }
 0x429   :  { %1593 = vst [vmem:[#allocation10 + $0x8] sm:$0xff] %v1569_v12 }
 0x42a   :  { %1592 = vst [vmem:[#allocation10] sm:$0xff] %v1568_v23 }
 0x42c   :  { %v2126_v32 = vpop.f32.mrb[52].mxu0 }
 0x42d   :  { %v1527_v25 = vpop.f32.mrb[53].mxu0 }
 0x434   :  { %v2129_v41 = vpop.f32.mrb[36].mxu1 }
 0x435   :  { %v1537_v38 = vpop.f32.mrb[37].mxu1 }
 0x43c   :  { %v2132_v26 = vpop.f32.mrb[38].mxu1 }
 0x43d   :  { %v1553_v46 = vadd.f32 %v2132_v26, %v1681_v3  ;;  %v1547_v49 = vpop.f32.mrb[39].mxu1 }
 0x43e   :  { %v1548_v31 = vadd.f32 %v1681_v3, %v1547_v49 }
 0x43f   :  { %v1575_v50 = vadd.f32 %v1553_v46, %v3157_v13 }
 0x440   :  { %v1574_v8 = vadd.f32 %v1548_v31, %v3160_v0 }
 0x441   :  { %1598 = vst [vmem:[#allocation10 + $0x18] sm:$0xff] %v1575_v50 }
 0x442   :  { %1597 = vst [vmem:[#allocation10 + $0x10] sm:$0xff] %v1574_v8 }
 0x443   :  { %2503 = shalt.err (!%p2500_p2)
}
 0x444   :  { %s2504_s21 = scalar_lea.hbm %s3275_s5, 512 }
 0x445   :  { %p2505_p3 = scmp.ne.s32.totalorder %s3275_s5, %s2504_s21  ;;  %p2508_p4 = scmp.lt.u32.totalorder %s2504_s21, %s3275_s5 }
 0x447   :  { %p2510_p5 = pnand %p2508_p4, %p2505_p3 }
 0x449   :  { %2513 = shalt.err (!%p2510_p5)
}
 0x44a   :  { %s2533_s7 = smov 128   ;;  %s2534_s8 = smov 8   ;;  %v2135_v53 = vpop.f32.mrb[40].mxu1 }
 0x44b   :  { %1614 = dma.vmem_to_hbm [thread:$0]  %s1609_s25, 512, %s3275_s5, [#allocation11], %s2533_s7, %s2533_s7, %s2534_s8   ;;  %v1557_v54 = vpop.f32.mrb[41].mxu1 }
 0x44c   :  { %2524 = dma.done.wait [#allocation11], 512  }
 0x44d   :  { %2525 = vsyncadd [#allocation11], 4294966784 }
 0x44e   :  { %1618 = vsyncpa [#allocation11], 1 }
 0x44f   :  { %1619 = vsyncmov [#allocation3] }
 0x452   :  { %s1620_s11 = vpop.sfrf %1619 }
 0x453   :  { %p1682_p6 = scmp.ne.s32.totalorder %s1620_s11, 0 }
 0x455   :  { %1624 = shalt.err (%p1682_p6)  }
 0x456   :  { %1626 = vsyncmov [#allocation3 + $0x1] }
 0x459   :  { %s1627_s12 = vpop.sfrf %1626 }
 0x45a   :  { %p1683_p7 = scmp.ne.s32.totalorder %s1627_s12, 0 }
 0x45c   :  { %1631 = shalt.err (%p1683_p7)  }
 0x45d   :  { %1632 = vsyncmov [#allocation9] }
 0x460   :  { %s1633_s3 = vpop.sfrf %1632 }
 0x461   :  { %p1684_p8 = scmp.ne.s32.totalorder %s1633_s3, 0 }
 0x463   :  { %1637 = shalt.err (%p1684_p8)  }
 0x464   :  { %1639 = vsyncmov [#allocation9 + $0x1] }
 0x467   :  { %s1640_s13 = vpop.sfrf %1639 }
 0x468   :  { %p1685_p9 = scmp.ne.s32.totalorder %s1640_s13, 0 }
 0x46a   :  { %1644 = shalt.err (%p1685_p9)  }
 0x46b   :  { %1646 = vsyncmov [#allocation9 + $0x2] }
 0x46e   :  { %s1647_s5 = vpop.sfrf %1646 }
 0x46f   :  { %p1686_p10 = scmp.ne.s32.totalorder %s1647_s5, 0 }
 0x471   :  { %1651 = shalt.err (%p1686_p10)  }
 0x472   :  { %1653 = vsyncmov [#allocation9 + $0x3] }
 0x475   :  { %s1654_s14 = vpop.sfrf %1653 }
 0x476   :  { %p1687_p11 = scmp.ne.s32.totalorder %s1654_s14, 0 }
 0x478   :  { %1658 = shalt.err (%p1687_p11)  }

</bundles_post_ra>
